<compile_context>
chip_gen: v7x
topology: tpu7x:2x2x1
jax: 0.10.0
libtpu: 0.0.40
codegen_flags: <defaults>
</compile_context>

<pallas_src>
import functools

import jax
import jax.numpy as jnp
from jax.experimental import pallas as pl
from jax.experimental.pallas import tpu as pltpu


_LANE = 128


# ------------------------------------------------------------------ helpers --
def _round_up(n, m):
    return ((n + m - 1) // m) * m


def _pick_tile(dim, candidates=(512, 256, 128)):
    """Largest tile in `candidates` dividing `dim` (dim is a multiple of 128)."""
    for t in candidates:
        if dim % t == 0:
            return t
    return dim


def _pad2d(x, rows, cols):
    r, c = x.shape
    if (r, c) == (rows, cols):
        return x
    return jnp.pad(x, ((0, rows - r), (0, cols - c)))


# --------------------------------------- fused degree / norm (single A pass) --
def _degree_norm_kernel(a_ref, src_ref, dst_ref, src_acc, dst_acc):
    # grid = (jo, ii): jo = column block (outer), ii = row block (inner)
    jo = pl.program_id(0)
    ii = pl.program_id(1)
    njo = pl.num_programs(0)
    nii = pl.num_programs(1)
    tr = a_ref.shape[0]

    @pl.when((jo == 0) & (ii == 0))
    def _():
        dst_acc[...] = jnp.zeros_like(dst_acc)      # grid-resident (N,1) acc

    @pl.when(ii == 0)
    def _():
        src_acc[...] = jnp.zeros_like(src_acc)      # per-column-block (1,tc) acc

    ind = (a_ref[...] != 0).astype(jnp.float32)     # unweighted structure

    # source (column) degrees: reduce over rows, accumulated over inner axis.
    src_acc[...] += jnp.sum(ind, axis=0, keepdims=True)          # (1, tc)

    # destination (row) degrees: reduce over columns, accumulate into the
    # grid-resident full-height scratch at a 128-aligned sublane offset.
    row = jnp.sum(ind, axis=1, keepdims=True)                    # (tr, 1)
    off = pl.multiple_of(ii * tr, tr)
    dst_acc[pl.ds(off, tr), :] = dst_acc[pl.ds(off, tr), :] + row

    @pl.when(ii == nii - 1)
    def _():
        deg = src_acc[...]
        # DGL norm='both': deg^{-1/2}, inf (zero-degree) -> 0
        src_ref[...] = jnp.where(deg > 0.0,
                                 jax.lax.rsqrt(jnp.maximum(deg, 1.0)), 0.0)

    @pl.when((jo == njo - 1) & (ii == nii - 1))
    def _():
        deg = dst_acc[...]
        dst_ref[...] = jnp.where(deg > 0.0,
                                 jax.lax.rsqrt(jnp.maximum(deg, 1.0)), 0.0)


def degree_norms(a_pad):
    """Single tiled pass over A producing D_dst^{-1/2} (N,1) and D_src^{-1/2} (1,N)."""
    n = a_pad.shape[0]
    tr = _pick_tile(n)   # row tile (inner grid axis)
    tc = _pick_tile(n)   # column tile (outer grid axis)
    cost = pl.CostEstimate(flops=2 * n * n, transcendentals=0,
                           bytes_accessed=n * n * 4 + 8 * n)
    norm_src, norm_dst = pl.pallas_call(
        _degree_norm_kernel,
        out_shape=(jax.ShapeDtypeStruct((1, n), jnp.float32),
                   jax.ShapeDtypeStruct((n, 1), jnp.float32)),
        grid=(n // tc, n // tr),
        in_specs=[pl.BlockSpec((tr, tc), lambda jo, ii: (ii, jo))],
        out_specs=(pl.BlockSpec((1, tc), lambda jo, ii: (0, jo)),
                   pl.BlockSpec((n, 1), lambda jo, ii: (0, 0))),
        scratch_shapes=[pltpu.VMEM((1, tc), jnp.float32),
                        pltpu.VMEM((n, 1), jnp.float32)],
        compiler_params=pltpu.CompilerParams(
            dimension_semantics=("arbitrary", "arbitrary")),
        cost_estimate=cost,
    )(a_pad)
    return norm_dst, norm_src


# ------------------------------------------ adjacency scaling (+edge_w fuse) --
def _scale_adj_kernel(*refs, has_edge_w):
    if has_edge_w:
        a_ref, ew_ref, nd_ref, ns_ref, o_ref = refs
    else:
        a_ref, nd_ref, ns_ref, o_ref = refs
    a = a_ref[...].astype(jnp.float32)
    if has_edge_w:
        a = a * ew_ref[...].astype(jnp.float32)          # fused edge weights
    o_ref[...] = (nd_ref[...] * a * ns_ref[...]).astype(o_ref.dtype)


def normalize_adj(a_pad, edge_w_pad=None):
    """A_hat = D_dst^{-1/2} (A * edge_w) D_src^{-1/2}, emitted in bf16 for the MXU."""
    n = a_pad.shape[0]
    norm_dst, norm_src = degree_norms(a_pad)
    tm = _pick_tile(n)
    tn = _pick_tile(n)

    has_ew = edge_w_pad is not None
    kernel = functools.partial(_scale_adj_kernel, has_edge_w=has_ew)

    in_specs = [pl.BlockSpec((tm, tn), lambda i, j: (i, j))]
    operands = [a_pad]
    if has_ew:
        in_specs.append(pl.BlockSpec((tm, tn), lambda i, j: (i, j)))
        operands.append(edge_w_pad)
    in_specs += [pl.BlockSpec((tm, 1), lambda i, j: (i, 0)),
                 pl.BlockSpec((1, tn), lambda i, j: (0, j))]
    operands += [norm_dst, norm_src]

    return pl.pallas_call(
        kernel,
        out_shape=jax.ShapeDtypeStruct((n, n), jnp.bfloat16),
        grid=(n // tm, n // tn),
        in_specs=in_specs,
        out_specs=pl.BlockSpec((tm, tn), lambda i, j: (i, j)),
        compiler_params=pltpu.CompilerParams(
            dimension_semantics=("parallel", "parallel")),
    )(*operands)


# ----------------------------- generic tiled matmul with fused bias/ReLU tail --
def _matmul_kernel(*refs, has_bias, apply_act):
    if has_bias:
        x_ref, y_ref, b_ref, o_ref, acc_ref = refs
    else:
        x_ref, y_ref, o_ref, acc_ref = refs
    k = pl.program_id(2)

    @pl.when(k == 0)
    def _():
        acc_ref[...] = jnp.zeros_like(acc_ref)

    acc_ref[...] += jnp.dot(x_ref[...].astype(jnp.bfloat16),
                            y_ref[...].astype(jnp.bfloat16),
                            preferred_element_type=jnp.float32)

    @pl.when(k == pl.num_programs(2) - 1)
    def _():
        out = acc_ref[...]                       # bias/ReLU kept in f32 (VPU)
        if has_bias:
            out = out + b_ref[...]
        if apply_act:
            out = jnp.maximum(out, 0.0)
        o_ref[...] = out.astype(o_ref.dtype)


def matmul(x, y, bias=None, *, apply_act=False, out_dtype=jnp.bfloat16):
    """out = act(x @ y + bias) with bf16 MXU inputs and f32 accumulation."""
    m, k = x.shape
    k2, n = y.shape
    assert k == k2
    tm, tn, tk = _pick_tile(m), _pick_tile(n), _pick_tile(k)
    has_bias = bias is not None
    kernel = functools.partial(_matmul_kernel,
                               has_bias=has_bias, apply_act=apply_act)

    in_specs = [pl.BlockSpec((tm, tk), lambda i, j, kk: (i, kk)),
                pl.BlockSpec((tk, tn), lambda i, j, kk: (kk, j))]
    operands = [x, y]
    if has_bias:
        in_specs.append(pl.BlockSpec((1, tn), lambda i, j, kk: (0, j)))
        operands.append(bias)

    bytes_accessed = (m * k * x.dtype.itemsize + k * n * y.dtype.itemsize
                      + m * n * jnp.dtype(out_dtype).itemsize
                      + (n * 4 if has_bias else 0))
    cost = pl.CostEstimate(flops=2 * m * n * k, transcendentals=0,
                           bytes_accessed=int(bytes_accessed))

    return pl.pallas_call(
        kernel,
        out_shape=jax.ShapeDtypeStruct((m, n), out_dtype),
        grid=(m // tm, n // tn, k // tk),
        in_specs=in_specs,
        out_specs=pl.BlockSpec((tm, tn), lambda i, j, kk: (i, j)),
        scratch_shapes=[pltpu.VMEM((tm, tn), jnp.float32)],
        compiler_params=pltpu.CompilerParams(
            dimension_semantics=("parallel", "parallel", "arbitrary")),
        cost_estimate=cost,
    )(*operands)


# ---------------------------------------------------------- model + forward --
def init_gcn_params(key, in_feats, n_hidden, n_layers, out_feats):
    """Glorot-uniform weights; small random biases (to exercise the bias path)."""
    dims = [in_feats] + [n_hidden] * n_layers + [out_feats]
    params = []
    for f_in, f_out in zip(dims[:-1], dims[1:]):
        key, wk, bk = jax.random.split(key, 3)
        limit = (6.0 / (f_in + f_out)) ** 0.5
        w = jax.random.uniform(wk, (f_in, f_out), jnp.float32, -limit, limit)
        b = jax.random.uniform(bk, (1, f_out), jnp.float32, -0.1, 0.1)
        params.append((w, b))
    return params


def gcn_forward(adj, features, params, edge_w=None):
    """Forward pass of the GCN stack.

    adj:      [N, N] dense adjacency (A[dst, src] != 0 for edge src->dst)
    features: [N, in_feats]
    edge_w:   optional [N, N] dense per-edge weights
    """
    n, in_feats = features.shape
    n_pad = _round_up(max(n, _LANE), _LANE)

    a_pad = _pad2d(adj.astype(jnp.float32), n_pad, n_pad)
    ew_pad = None if edge_w is None else _pad2d(
        edge_w.astype(jnp.float32), n_pad, n_pad)
    a_hat = normalize_adj(a_pad, ew_pad)                       # bf16 [Np, Np]

    h = _pad2d(features.astype(jnp.float32), n_pad,
               _round_up(max(in_feats, _LANE), _LANE))

    n_total = len(params)
    out_feats = params[-1][0].shape[1]
    # TODO(synk): when A_hat fits whole in VMEM (N <~ 4000 bf16 on v7x) fuse the
    # layer loop into one pallas_call keeping A_hat resident instead of
    # re-streaming it from HBM once per layer.
    for i, (w, b) in enumerate(params):
        f_in, f_out = w.shape
        f_in_p = _round_up(max(f_in, _LANE), _LANE)
        f_out_p = _round_up(max(f_out, _LANE), _LANE)
        w_pad = _pad2d(w.astype(jnp.float32), f_in_p, f_out_p)
        b_pad = _pad2d(b.astype(jnp.float32), 1, f_out_p)
        is_last = (i == n_total - 1)
        out_dt = jnp.float32 if is_last else jnp.bfloat16
        # dropout between layers: identity at inference (eval mode), omitted.
        if f_in_p >= f_out_p:
            # transform first: A_hat @ (H W)   (N^2 matmul uses the narrow dim)
            hw = matmul(h, w_pad)                               # bf16, once
            h = matmul(a_hat, hw, b_pad, apply_act=not is_last, out_dtype=out_dt)
        else:
            # aggregate first: (A_hat H) W
            ah = matmul(a_hat, h)                               # bf16, once
            h = matmul(ah, w_pad, b_pad, apply_act=not is_last, out_dtype=out_dt)
    return h[:n, :out_feats]


def _gcn_reference(adj, features, params, edge_w=None):
    """Pure-JAX f32 reference with DGL norm='both' semantics."""
    ind = (adj != 0).astype(jnp.float32)
    deg_dst = jnp.sum(ind, axis=1)
    deg_src = jnp.sum(ind, axis=0)
    nd = jnp.where(deg_dst > 0, deg_dst ** -0.5, 0.0)[:, None]
    ns = jnp.where(deg_src > 0, deg_src ** -0.5, 0.0)[None, :]
    a_eff = adj if edge_w is None else adj * edge_w
    a_hat = nd * a_eff * ns
    h = features
    for i, (w, b) in enumerate(params):
        h = a_hat @ (h @ w) + b
        if i != len(params) - 1:
            h = jnp.maximum(h, 0.0)
    return h


if __name__ == "__main__":
    key = jax.random.PRNGKey(0)
    k_adj, k_feat, k_param, k_ew = jax.random.split(key, 4)

    # small graph: 16 nodes, in_feats=32, n_hidden=32, n_layers=2, out_feats=16
    N, IN_FEATS, N_HIDDEN, N_LAYERS, OUT_FEATS = 16, 32, 32, 2, 16

    # random undirected graph with self-loops
    upper = (jax.random.uniform(k_adj, (N, N)) < 0.3).astype(jnp.float32)
    adj = jnp.clip(upper + upper.T + jnp.eye(N, dtype=jnp.float32), 0.0, 1.0)

    features = jax.random.normal(k_feat, (N, IN_FEATS), jnp.float32)
    params = init_gcn_params(k_param, IN_FEATS, N_HIDDEN, N_LAYERS, OUT_FEATS)
    edge_w = jax.random.uniform(k_ew, (N, N), jnp.float32, 0.5, 1.5)

    # --- no edge weights ---
    fwd = jax.jit(lambda a, f, p: gcn_forward(a, f, p))
    out = jax.block_until_ready(fwd(adj, features, params))
    assert out.shape == (N, OUT_FEATS)
    assert bool(jnp.all(jnp.isfinite(out)))
    ref = _gcn_reference(adj, features, params)
    assert bool(jnp.allclose(out, ref, rtol=5e-2, atol=5e-2)), (
        float(jnp.max(jnp.abs(out - ref))))

    # --- with edge weights (fused into the normalization kernel) ---
    fwd_ew = jax.jit(lambda a, f, p, e: gcn_forward(a, f, p, e))
    out_ew = jax.block_until_ready(fwd_ew(adj, features, params, edge_w))
    ref_ew = _gcn_reference(adj, features, params, edge_w)
    assert bool(jnp.allclose(out_ew, ref_ew, rtol=5e-2, atol=5e-2)), (
        float(jnp.max(jnp.abs(out_ew - ref_ew))))

    print("KERNEL_OK")
</pallas_src>

<mosaic_0001>
module attributes {stable_mosaic.version = 11 : i64} {
  func.func @_scale_adj_kernel(%arg0: i32, %arg1: i32, %arg2: memref<128x128xf32, #tpu.memory_space<vmem>>, %arg3: memref<128x1xf32, #tpu.memory_space<vmem>>, %arg4: memref<1x128xf32, #tpu.memory_space<vmem>>, %arg5: memref<128x128xbf16, #tpu.memory_space<vmem>>) attributes {dimension_semantics = [#tpu.dimension_semantics<parallel>, #tpu.dimension_semantics<parallel>], iteration_bounds = array<i64: 1, 1>, scalar_prefetch = 0 : i64, scratch_operands = 0 : i64, tpu.core_type = #tpu.core_type<tc>, window_params = [{transform_indices = @transform_0, window_bounds = array<i64: 128, 128>}, {transform_indices = @transform_1, window_bounds = array<i64: 128, 1>}, {transform_indices = @transform_2, window_bounds = array<i64: 1, 128>}, {transform_indices = @transform_3, window_bounds = array<i64: 128, 128>}]} {
    %c0 = arith.constant 0 : index
    %c0_0 = arith.constant 0 : index
    %0 = vector.load %arg2[%c0, %c0_0] : memref<128x128xf32, #tpu.memory_space<vmem>>, vector<128x128xf32>
    %c0_1 = arith.constant 0 : index
    %c0_2 = arith.constant 0 : index
    %1 = vector.load %arg3[%c0_1, %c0_2] : memref<128x1xf32, #tpu.memory_space<vmem>>, vector<128x1xf32>
    %2 = vector.broadcast %1 : vector<128x1xf32> to vector<128x128xf32>
    %3 = arith.mulf %2, %0 : vector<128x128xf32>
    %c0_3 = arith.constant 0 : index
    %c0_4 = arith.constant 0 : index
    %4 = vector.load %arg4[%c0_3, %c0_4] : memref<1x128xf32, #tpu.memory_space<vmem>>, vector<1x128xf32>
    %5 = vector.broadcast %4 : vector<1x128xf32> to vector<128x128xf32>
    %6 = arith.mulf %3, %5 : vector<128x128xf32>
    %7 = arith.truncf %6 : vector<128x128xf32> to vector<128x128xbf16>
    %c0_5 = arith.constant 0 : index
    %c0_6 = arith.constant 0 : index
    %8 = vector.load %arg5[%c0_5, %c0_6] : memref<128x128xbf16, #tpu.memory_space<vmem>>, vector<128x128xbf16>
    tpu.vector_store %arg5[%c0_5, %c0_6], %7 {strides = array<i32>} : memref<128x128xbf16, #tpu.memory_space<vmem>>, vector<128x128xbf16>,
    return
  }
  func.func @transform_0(%arg0: i32, %arg1: i32) -> (i32, i32) {
    %c0_i32 = arith.constant 0 : i32
    return %arg0, %arg1 : i32, i32
  }
  func.func @transform_1(%arg0: i32, %arg1: i32) -> (i32, i32) {
    %c0_i32 = arith.constant 0 : i32
    %c0_i32_0 = arith.constant 0 : i32
    return %arg0, %c0_i32 : i32, i32
  }
  func.func @transform_2(%arg0: i32, %arg1: i32) -> (i32, i32) {
    %c0_i32 = arith.constant 0 : i32
    %c0_i32_0 = arith.constant 0 : i32
    return %c0_i32, %arg1 : i32, i32
  }
  func.func @transform_3(%arg0: i32, %arg1: i32) -> (i32, i32) {
    %c0_i32 = arith.constant 0 : i32
    return %arg0, %arg1 : i32, i32
  }
}

module attributes {stable_mosaic.version = 11 : i64} {
  func.func @_degree_norm_kernel(%arg0: i32, %arg1: i32, %arg2: memref<128x128xf32, #tpu.memory_space<vmem>>, %arg3: memref<1x128xf32, #tpu.memory_space<vmem>>, %arg4: memref<128x1xf32, #tpu.memory_space<vmem>>, %arg5: memref<1x128xf32, #tpu.memory_space<vmem>>, %arg6: memref<128x1xf32, #tpu.memory_space<vmem>>) attributes {dimension_semantics = [#tpu.dimension_semantics<arbitrary>, #tpu.dimension_semantics<arbitrary>], iteration_bounds = array<i64: 1, 1>, scalar_prefetch = 0 : i64, scratch_operands = 2 : i64, tpu.core_type = #tpu.core_type<tc>, window_params = [{transform_indices = @transform_0, window_bounds = array<i64: 128, 128>}, {transform_indices = @transform_1, window_bounds = array<i64: 1, 128>}, {pipeline_mode = #tpu.pipeline_mode<synchronous>, transform_indices = @transform_2, window_bounds = array<i64: 128, 1>}]} {
    %c0_i32 = arith.constant 0 : i32
    %0 = arith.cmpi eq, %arg0, %c0_i32 : i32
    %c0_i32_0 = arith.constant 0 : i32
    %1 = arith.cmpi eq, %arg1, %c0_i32_0 : i32
    %2 = arith.andi %0, %1 : i1
    %3 = arith.extui %2 : i1 to i32
    %c0_i32_1 = arith.constant 0 : i32
    %4 = arith.cmpi ne, %3, %c0_i32_1 : i32
    scf.if %4 {
      %cst_18 = arith.constant 0.000000e+00 : f32
      %35 = vector.broadcast %cst_18 : f32 to vector<128x1xf32>
      %c0_19 = arith.constant 0 : index
      %c0_20 = arith.constant 0 : index
      %36 = vector.load %arg6[%c0_19, %c0_20] : memref<128x1xf32, #tpu.memory_space<vmem>>, vector<128x1xf32>
      tpu.vector_store %arg6[%c0_19, %c0_20], %35 {strides = array<i32>} : memref<128x1xf32, #tpu.memory_space<vmem>>, vector<128x1xf32>,
    } else {
    }
    %c0_i32_2 = arith.constant 0 : i32
    %5 = arith.cmpi eq, %arg1, %c0_i32_2 : i32
    %6 = arith.extui %5 : i1 to i32
    %c0_i32_3 = arith.constant 0 : i32
    %7 = arith.cmpi ne, %6, %c0_i32_3 : i32
    scf.if %7 {
      %cst_18 = arith.constant 0.000000e+00 : f32
      %35 = vector.broadcast %cst_18 : f32 to vector<1x128xf32>
      %c0_19 = arith.constant 0 : index
      %c0_20 = arith.constant 0 : index
      %36 = vector.load %arg5[%c0_19, %c0_20] : memref<1x128xf32, #tpu.memory_space<vmem>>, vector<1x128xf32>
      tpu.vector_store %arg5[%c0_19, %c0_20], %35 {strides = array<i32>} : memref<1x128xf32, #tpu.memory_space<vmem>>, vector<1x128xf32>,
    } else {
    }
    %c0 = arith.constant 0 : index
    %c0_4 = arith.constant 0 : index
    %8 = vector.load %arg2[%c0, %c0_4] : memref<128x128xf32, #tpu.memory_space<vmem>>, vector<128x128xf32>
    %cst = arith.constant 0.000000e+00 : f32
    %9 = vector.broadcast %cst : f32 to vector<128x128xf32>
    %10 = arith.cmpf one, %8, %9 : vector<128x128xf32>
    %11 = arith.extui %10 : vector<128x128xi1> to vector<128x128xi32>
    %12 = arith.sitofp %11 : vector<128x128xi32> to vector<128x128xf32>
    %c0_5 = arith.constant 0 : index
    %c0_6 = arith.constant 0 : index
    %13 = vector.load %arg5[%c0_5, %c0_6] : memref<1x128xf32, #tpu.memory_space<vmem>>, vector<1x128xf32>
    %cst_7 = arith.constant dense<0.000000e+00> : vector<128xf32>
    %14 = vector.multi_reduction <add>, %12, %cst_7 [0] : vector<128x128xf32> to vector<128xf32>
    %15 = vector.shape_cast %14 : vector<128xf32> to vector<1x128xf32>
    %16 = arith.addf %13, %15 : vector<1x128xf32>
    %c0_8 = arith.constant 0 : index
    %c0_9 = arith.constant 0 : index
    %17 = vector.load %arg5[%c0_8, %c0_9] : memref<1x128xf32, #tpu.memory_space<vmem>>, vector<1x128xf32>
    tpu.vector_store %arg5[%c0_8, %c0_9], %16 {strides = array<i32>} : memref<1x128xf32, #tpu.memory_space<vmem>>, vector<1x128xf32>,
    %cst_10 = arith.constant dense<0.000000e+00> : vector<128xf32>
    %18 = vector.multi_reduction <add>, %12, %cst_10 [1] : vector<128x128xf32> to vector<128xf32>
    %19 = vector.shape_cast %18 : vector<128xf32> to vector<128x1xf32>
    %c128_i32 = arith.constant 128 : i32
    %20 = arith.muli %arg1, %c128_i32 : i32
    %21 = tpu.assume_multiple %20, 128 : i32
    %22 = arith.index_cast %21 : i32 to index
    %c0_11 = arith.constant 0 : index
    %23 = vector.load %arg6[%22, %c0_11] : memref<128x1xf32, #tpu.memory_space<vmem>>, vector<128x1xf32>
    %24 = arith.addf %23, %19 : vector<128x1xf32>
    %25 = arith.index_cast %21 : i32 to index
    %c0_12 = arith.constant 0 : index
    %26 = vector.load %arg6[%25, %c0_12] : memref<128x1xf32, #tpu.memory_space<vmem>>, vector<128x1xf32>
    tpu.vector_store %arg6[%25, %c0_12], %24 {strides = array<i32>} : memref<128x1xf32, #tpu.memory_space<vmem>>, vector<128x1xf32>,
    %c0_i32_13 = arith.constant 0 : i32
    %27 = arith.cmpi eq, %arg1, %c0_i32_13 : i32
    %28 = arith.extui %27 : i1 to i32
    %c0_i32_14 = arith.constant 0 : i32
    %29 = arith.cmpi ne, %28, %c0_i32_14 : i32
    scf.if %29 {
      %c0_18 = arith.constant 0 : index
      %c0_19 = arith.constant 0 : index
      %35 = vector.load %arg5[%c0_18, %c0_19] : memref<1x128xf32, #tpu.memory_space<vmem>>, vector<1x128xf32>
      %cst_20 = arith.constant 0.000000e+00 : f32
      %36 = vector.broadcast %cst_20 : f32 to vector<1x128xf32>
      %37 = arith.cmpf ogt, %35, %36 : vector<1x128xf32>
      %cst_21 = arith.constant 1.000000e+00 : f32
      %38 = vector.broadcast %cst_21 : f32 to vector<1x128xf32>
      %39 = arith.maximumf %35, %38 : vector<1x128xf32>
      %40 = math.rsqrt %39 : vector<1x128xf32>
      %cst_22 = arith.constant 0.000000e+00 : f32
      %41 = vector.broadcast %cst_22 : f32 to vector<1x128xf32>
      %42 = arith.select %37, %40, %41 : vector<1x128xi1>, vector<1x128xf32>
      %c0_23 = arith.constant 0 : index
      %c0_24 = arith.constant 0 : index
      %43 = vector.load %arg3[%c0_23, %c0_24] : memref<1x128xf32, #tpu.memory_space<vmem>>, vector<1x128xf32>
      tpu.vector_store %arg3[%c0_23, %c0_24], %42 {strides = array<i32>} : memref<1x128xf32, #tpu.memory_space<vmem>>, vector<1x128xf32>,
    } else {
    }
    %c0_i32_15 = arith.constant 0 : i32
    %30 = arith.cmpi eq, %arg0, %c0_i32_15 : i32
    %c0_i32_16 = arith.constant 0 : i32
    %31 = arith.cmpi eq, %arg1, %c0_i32_16 : i32
    %32 = arith.andi %30, %31 : i1
    %33 = arith.extui %32 : i1 to i32
    %c0_i32_17 = arith.constant 0 : i32
    %34 = arith.cmpi ne, %33, %c0_i32_17 : i32
    scf.if %34 {
      %c0_18 = arith.constant 0 : index
      %c0_19 = arith.constant 0 : index
      %35 = vector.load %arg6[%c0_18, %c0_19] : memref<128x1xf32, #tpu.memory_space<vmem>>, vector<128x1xf32>
      %cst_20 = arith.constant 0.000000e+00 : f32
      %36 = vector.broadcast %cst_20 : f32 to vector<128x1xf32>
      %37 = arith.cmpf ogt, %35, %36 : vector<128x1xf32>
      %cst_21 = arith.constant 1.000000e+00 : f32
      %38 = vector.broadcast %cst_21 : f32 to vector<128x1xf32>
      %39 = arith.maximumf %35, %38 : vector<128x1xf32>
      %40 = math.rsqrt %39 : vector<128x1xf32>
      %cst_22 = arith.constant 0.000000e+00 : f32
      %41 = vector.broadcast %cst_22 : f32 to vector<128x1xf32>
      %42 = arith.select %37, %40, %41 : vector<128x1xi1>, vector<128x1xf32>
      %c0_23 = arith.constant 0 : index
      %c0_24 = arith.constant 0 : index
      %43 = vector.load %arg4[%c0_23, %c0_24] : memref<128x1xf32, #tpu.memory_space<vmem>>, vector<128x1xf32>
      tpu.vector_store %arg4[%c0_23, %c0_24], %42 {strides = array<i32>} : memref<128x1xf32, #tpu.memory_space<vmem>>, vector<128x1xf32>,
    } else {
    }
    return
  }
  func.func @transform_0(%arg0: i32, %arg1: i32) -> (i32, i32) {
    %c0_i32 = arith.constant 0 : i32
    return %arg1, %arg0 : i32, i32
  }
  func.func @transform_1(%arg0: i32, %arg1: i32) -> (i32, i32) {
    %c0_i32 = arith.constant 0 : i32
    %c0_i32_0 = arith.constant 0 : i32
    return %c0_i32, %arg0 : i32, i32
  }
  func.func @transform_2(%arg0: i32, %arg1: i32) -> (i32, i32) {
    %c0_i32 = arith.constant 0 : i32
    %c0_i32_0 = arith.constant 0 : i32
    %c0_i32_1 = arith.constant 0 : i32
    return %c0_i32, %c0_i32_0 : i32, i32
  }
}

module attributes {stable_mosaic.version = 11 : i64} {
  func.func @_matmul_kernel(%arg0: i32, %arg1: i32, %arg2: i32, %arg3: memref<128x128xf32, #tpu.memory_space<vmem>>, %arg4: memref<128x128xf32, #tpu.memory_space<vmem>>, %arg5: memref<128x128xbf16, #tpu.memory_space<vmem>>, %arg6: memref<128x128xf32, #tpu.memory_space<vmem>>) attributes {dimension_semantics = [#tpu.dimension_semantics<parallel>, #tpu.dimension_semantics<parallel>, #tpu.dimension_semantics<arbitrary>], iteration_bounds = array<i64: 1, 1, 1>, scalar_prefetch = 0 : i64, scratch_operands = 1 : i64, tpu.core_type = #tpu.core_type<tc>, window_params = [{transform_indices = @transform_0, window_bounds = array<i64: 128, 128>}, {transform_indices = @transform_1, window_bounds = array<i64: 128, 128>}, {transform_indices = @transform_2, window_bounds = array<i64: 128, 128>}]} {
    %c0_i32 = arith.constant 0 : i32
    %0 = arith.cmpi eq, %arg2, %c0_i32 : i32
    %1 = arith.extui %0 : i1 to i32
    %c0_i32_0 = arith.constant 0 : i32
    %2 = arith.cmpi ne, %1, %c0_i32_0 : i32
    scf.if %2 {
      %cst_10 = arith.constant 0.000000e+00 : f32
      %14 = vector.broadcast %cst_10 : f32 to vector<128x128xf32>
      %c0_11 = arith.constant 0 : index
      %c0_12 = arith.constant 0 : index
      %15 = vector.load %arg6[%c0_11, %c0_12] : memref<128x128xf32, #tpu.memory_space<vmem>>, vector<128x128xf32>
      tpu.vector_store %arg6[%c0_11, %c0_12], %14 {strides = array<i32>} : memref<128x128xf32, #tpu.memory_space<vmem>>, vector<128x128xf32>,
    } else {
    }
    %c0 = arith.constant 0 : index
    %c0_1 = arith.constant 0 : index
    %3 = vector.load %arg6[%c0, %c0_1] : memref<128x128xf32, #tpu.memory_space<vmem>>, vector<128x128xf32>
    %c0_2 = arith.constant 0 : index
    %c0_3 = arith.constant 0 : index
    %4 = vector.load %arg3[%c0_2, %c0_3] : memref<128x128xf32, #tpu.memory_space<vmem>>, vector<128x128xf32>
    %5 = arith.truncf %4 : vector<128x128xf32> to vector<128x128xbf16>
    %c0_4 = arith.constant 0 : index
    %c0_5 = arith.constant 0 : index
    %6 = vector.load %arg4[%c0_4, %c0_5] : memref<128x128xf32, #tpu.memory_space<vmem>>, vector<128x128xf32>
    %7 = arith.truncf %6 : vector<128x128xf32> to vector<128x128xbf16>
    %cst = arith.constant dense<0.000000e+00> : vector<128x128xf32>
    %8 = tpu.matmul %5, %7, %cst {dimension_numbers = #tpu.dot_dimension_numbers<[1], [0], [0], [1], [0, 0, 1, 1], [], []>} : vector<128x128xbf16>, vector<128x128xbf16>, vector<128x128xf32> -> vector<128x128xf32>
    %9 = arith.addf %3, %8 : vector<128x128xf32>
    %c0_6 = arith.constant 0 : index
    %c0_7 = arith.constant 0 : index
    %10 = vector.load %arg6[%c0_6, %c0_7] : memref<128x128xf32, #tpu.memory_space<vmem>>, vector<128x128xf32>
    tpu.vector_store %arg6[%c0_6, %c0_7], %9 {strides = array<i32>} : memref<128x128xf32, #tpu.memory_space<vmem>>, vector<128x128xf32>,
    %c0_i32_8 = arith.constant 0 : i32
    %11 = arith.cmpi eq, %arg2, %c0_i32_8 : i32
    %12 = arith.extui %11 : i1 to i32
    %c0_i32_9 = arith.constant 0 : i32
    %13 = arith.cmpi ne, %12, %c0_i32_9 : i32
    scf.if %13 {
      %c0_10 = arith.constant 0 : index
      %c0_11 = arith.constant 0 : index
      %14 = vector.load %arg6[%c0_10, %c0_11] : memref<128x128xf32, #tpu.memory_space<vmem>>, vector<128x128xf32>
      %15 = arith.truncf %14 : vector<128x128xf32> to vector<128x128xbf16>
      %c0_12 = arith.constant 0 : index
      %c0_13 = arith.constant 0 : index
      %16 = vector.load %arg5[%c0_12, %c0_13] : memref<128x128xbf16, #tpu.memory_space<vmem>>, vector<128x128xbf16>
      tpu.vector_store %arg5[%c0_12, %c0_13], %15 {strides = array<i32>} : memref<128x128xbf16, #tpu.memory_space<vmem>>, vector<128x128xbf16>,
    } else {
    }
    return
  }
  func.func @transform_0(%arg0: i32, %arg1: i32, %arg2: i32) -> (i32, i32) {
    %c0_i32 = arith.constant 0 : i32
    return %arg0, %arg2 : i32, i32
  }
  func.func @transform_1(%arg0: i32, %arg1: i32, %arg2: i32) -> (i32, i32) {
    %c0_i32 = arith.constant 0 : i32
    return %arg2, %arg1 : i32, i32
  }
  func.func @transform_2(%arg0: i32, %arg1: i32, %arg2: i32) -> (i32, i32) {
    %c0_i32 = arith.constant 0 : i32
    return %arg0, %arg1 : i32, i32
  }
}

module attributes {stable_mosaic.version = 11 : i64} {
  func.func @_matmul_kernel(%arg0: i32, %arg1: i32, %arg2: i32, %arg3: memref<128x128xbf16, #tpu.memory_space<vmem>>, %arg4: memref<128x128xbf16, #tpu.memory_space<vmem>>, %arg5: memref<1x128xf32, #tpu.memory_space<vmem>>, %arg6: memref<128x128xbf16, #tpu.memory_space<vmem>>, %arg7: memref<128x128xf32, #tpu.memory_space<vmem>>) attributes {dimension_semantics = [#tpu.dimension_semantics<parallel>, #tpu.dimension_semantics<parallel>, #tpu.dimension_semantics<arbitrary>], iteration_bounds = array<i64: 1, 1, 1>, scalar_prefetch = 0 : i64, scratch_operands = 1 : i64, tpu.core_type = #tpu.core_type<tc>, window_params = [{transform_indices = @transform_0, window_bounds = array<i64: 128, 128>}, {transform_indices = @transform_1, window_bounds = array<i64: 128, 128>}, {transform_indices = @transform_2, window_bounds = array<i64: 1, 128>}, {transform_indices = @transform_3, window_bounds = array<i64: 128, 128>}]} {
    %c0_i32 = arith.constant 0 : i32
    %0 = arith.cmpi eq, %arg2, %c0_i32 : i32
    %1 = arith.extui %0 : i1 to i32
    %c0_i32_0 = arith.constant 0 : i32
    %2 = arith.cmpi ne, %1, %c0_i32_0 : i32
    scf.if %2 {
      %cst_10 = arith.constant 0.000000e+00 : f32
      %12 = vector.broadcast %cst_10 : f32 to vector<128x128xf32>
      %c0_11 = arith.constant 0 : index
      %c0_12 = arith.constant 0 : index
      %13 = vector.load %arg7[%c0_11, %c0_12] : memref<128x128xf32, #tpu.memory_space<vmem>>, vector<128x128xf32>
      tpu.vector_store %arg7[%c0_11, %c0_12], %12 {strides = array<i32>} : memref<128x128xf32, #tpu.memory_space<vmem>>, vector<128x128xf32>,
    } else {
    }
    %c0 = arith.constant 0 : index
    %c0_1 = arith.constant 0 : index
    %3 = vector.load %arg7[%c0, %c0_1] : memref<128x128xf32, #tpu.memory_space<vmem>>, vector<128x128xf32>
    %c0_2 = arith.constant 0 : index
    %c0_3 = arith.constant 0 : index
    %4 = vector.load %arg3[%c0_2, %c0_3] : memref<128x128xbf16, #tpu.memory_space<vmem>>, vector<128x128xbf16>
    %c0_4 = arith.constant 0 : index
    %c0_5 = arith.constant 0 : index
    %5 = vector.load %arg4[%c0_4, %c0_5] : memref<128x128xbf16, #tpu.memory_space<vmem>>, vector<128x128xbf16>
    %cst = arith.constant dense<0.000000e+00> : vector<128x128xf32>
    %6 = tpu.matmul %4, %5, %cst {dimension_numbers = #tpu.dot_dimension_numbers<[1], [0], [0], [1], [0, 0, 1, 1], [], []>} : vector<128x128xbf16>, vector<128x128xbf16>, vector<128x128xf32> -> vector<128x128xf32>
    %7 = arith.addf %3, %6 : vector<128x128xf32>
    %c0_6 = arith.constant 0 : index
    %c0_7 = arith.constant 0 : index
    %8 = vector.load %arg7[%c0_6, %c0_7] : memref<128x128xf32, #tpu.memory_space<vmem>>, vector<128x128xf32>
    tpu.vector_store %arg7[%c0_6, %c0_7], %7 {strides = array<i32>} : memref<128x128xf32, #tpu.memory_space<vmem>>, vector<128x128xf32>,
    %c0_i32_8 = arith.constant 0 : i32
    %9 = arith.cmpi eq, %arg2, %c0_i32_8 : i32
    %10 = arith.extui %9 : i1 to i32
    %c0_i32_9 = arith.constant 0 : i32
    %11 = arith.cmpi ne, %10, %c0_i32_9 : i32
    scf.if %11 {
      %c0_10 = arith.constant 0 : index
      %c0_11 = arith.constant 0 : index
      %12 = vector.load %arg7[%c0_10, %c0_11] : memref<128x128xf32, #tpu.memory_space<vmem>>, vector<128x128xf32>
      %c0_12 = arith.constant 0 : index
      %c0_13 = arith.constant 0 : index
      %13 = vector.load %arg5[%c0_12, %c0_13] : memref<1x128xf32, #tpu.memory_space<vmem>>, vector<1x128xf32>
      %14 = vector.broadcast %13 : vector<1x128xf32> to vector<128x128xf32>
      %15 = arith.addf %12, %14 : vector<128x128xf32>
      %cst_14 = arith.constant 0.000000e+00 : f32
      %16 = vector.broadcast %cst_14 : f32 to vector<128x128xf32>
      %17 = arith.maximumf %15, %16 : vector<128x128xf32>
      %18 = arith.truncf %17 : vector<128x128xf32> to vector<128x128xbf16>
      %c0_15 = arith.constant 0 : index
      %c0_16 = arith.constant 0 : index
      %19 = vector.load %arg6[%c0_15, %c0_16] : memref<128x128xbf16, #tpu.memory_space<vmem>>, vector<128x128xbf16>
      tpu.vector_store %arg6[%c0_15, %c0_16], %18 {strides = array<i32>} : memref<128x128xbf16, #tpu.memory_space<vmem>>, vector<128x128xbf16>,
    } else {
    }
    return
  }
  func.func @transform_0(%arg0: i32, %arg1: i32, %arg2: i32) -> (i32, i32) {
    %c0_i32 = arith.constant 0 : i32
    return %arg0, %arg2 : i32, i32
  }
  func.func @transform_1(%arg0: i32, %arg1: i32, %arg2: i32) -> (i32, i32) {
    %c0_i32 = arith.constant 0 : i32
    return %arg2, %arg1 : i32, i32
  }
  func.func @transform_2(%arg0: i32, %arg1: i32, %arg2: i32) -> (i32, i32) {
    %c0_i32 = arith.constant 0 : i32
    %c0_i32_0 = arith.constant 0 : i32
    return %c0_i32, %arg1 : i32, i32
  }
  func.func @transform_3(%arg0: i32, %arg1: i32, %arg2: i32) -> (i32, i32) {
    %c0_i32 = arith.constant 0 : i32
    return %arg0, %arg1 : i32, i32
  }
}

module attributes {stable_mosaic.version = 11 : i64} {
  func.func @_matmul_kernel(%arg0: i32, %arg1: i32, %arg2: i32, %arg3: memref<128x128xbf16, #tpu.memory_space<vmem>>, %arg4: memref<128x128xf32, #tpu.memory_space<vmem>>, %arg5: memref<128x128xbf16, #tpu.memory_space<vmem>>, %arg6: memref<128x128xf32, #tpu.memory_space<vmem>>) attributes {dimension_semantics = [#tpu.dimension_semantics<parallel>, #tpu.dimension_semantics<parallel>, #tpu.dimension_semantics<arbitrary>], iteration_bounds = array<i64: 1, 1, 1>, scalar_prefetch = 0 : i64, scratch_operands = 1 : i64, tpu.core_type = #tpu.core_type<tc>, window_params = [{transform_indices = @transform_0, window_bounds = array<i64: 128, 128>}, {transform_indices = @transform_1, window_bounds = array<i64: 128, 128>}, {transform_indices = @transform_2, window_bounds = array<i64: 128, 128>}]} {
    %c0_i32 = arith.constant 0 : i32
    %0 = arith.cmpi eq, %arg2, %c0_i32 : i32
    %1 = arith.extui %0 : i1 to i32
    %c0_i32_0 = arith.constant 0 : i32
    %2 = arith.cmpi ne, %1, %c0_i32_0 : i32
    scf.if %2 {
      %cst_10 = arith.constant 0.000000e+00 : f32
      %13 = vector.broadcast %cst_10 : f32 to vector<128x128xf32>
      %c0_11 = arith.constant 0 : index
      %c0_12 = arith.constant 0 : index
      %14 = vector.load %arg6[%c0_11, %c0_12] : memref<128x128xf32, #tpu.memory_space<vmem>>, vector<128x128xf32>
      tpu.vector_store %arg6[%c0_11, %c0_12], %13 {strides = array<i32>} : memref<128x128xf32, #tpu.memory_space<vmem>>, vector<128x128xf32>,
    } else {
    }
    %c0 = arith.constant 0 : index
    %c0_1 = arith.constant 0 : index
    %3 = vector.load %arg6[%c0, %c0_1] : memref<128x128xf32, #tpu.memory_space<vmem>>, vector<128x128xf32>
    %c0_2 = arith.constant 0 : index
    %c0_3 = arith.constant 0 : index
    %4 = vector.load %arg3[%c0_2, %c0_3] : memref<128x128xbf16, #tpu.memory_space<vmem>>, vector<128x128xbf16>
    %c0_4 = arith.constant 0 : index
    %c0_5 = arith.constant 0 : index
    %5 = vector.load %arg4[%c0_4, %c0_5] : memref<128x128xf32, #tpu.memory_space<vmem>>, vector<128x128xf32>
    %6 = arith.truncf %5 : vector<128x128xf32> to vector<128x128xbf16>
    %cst = arith.constant dense<0.000000e+00> : vector<128x128xf32>
    %7 = tpu.matmul %4, %6, %cst {dimension_numbers = #tpu.dot_dimension_numbers<[1], [0], [0], [1], [0, 0, 1, 1], [], []>} : vector<128x128xbf16>, vector<128x128xbf16>, vector<128x128xf32> -> vector<128x128xf32>
    %8 = arith.addf %3, %7 : vector<128x128xf32>
    %c0_6 = arith.constant 0 : index
    %c0_7 = arith.constant 0 : index
    %9 = vector.load %arg6[%c0_6, %c0_7] : memref<128x128xf32, #tpu.memory_space<vmem>>, vector<128x128xf32>
    tpu.vector_store %arg6[%c0_6, %c0_7], %8 {strides = array<i32>} : memref<128x128xf32, #tpu.memory_space<vmem>>, vector<128x128xf32>,
    %c0_i32_8 = arith.constant 0 : i32
    %10 = arith.cmpi eq, %arg2, %c0_i32_8 : i32
    %11 = arith.extui %10 : i1 to i32
    %c0_i32_9 = arith.constant 0 : i32
    %12 = arith.cmpi ne, %11, %c0_i32_9 : i32
    scf.if %12 {
      %c0_10 = arith.constant 0 : index
      %c0_11 = arith.constant 0 : index
      %13 = vector.load %arg6[%c0_10, %c0_11] : memref<128x128xf32, #tpu.memory_space<vmem>>, vector<128x128xf32>
      %14 = arith.truncf %13 : vector<128x128xf32> to vector<128x128xbf16>
      %c0_12 = arith.constant 0 : index
      %c0_13 = arith.constant 0 : index
      %15 = vector.load %arg5[%c0_12, %c0_13] : memref<128x128xbf16, #tpu.memory_space<vmem>>, vector<128x128xbf16>
      tpu.vector_store %arg5[%c0_12, %c0_13], %14 {strides = array<i32>} : memref<128x128xbf16, #tpu.memory_space<vmem>>, vector<128x128xbf16>,
    } else {
    }
    return
  }
  func.func @transform_0(%arg0: i32, %arg1: i32, %arg2: i32) -> (i32, i32) {
    %c0_i32 = arith.constant 0 : i32
    return %arg0, %arg2 : i32, i32
  }
  func.func @transform_1(%arg0: i32, %arg1: i32, %arg2: i32) -> (i32, i32) {
    %c0_i32 = arith.constant 0 : i32
    return %arg2, %arg1 : i32, i32
  }
  func.func @transform_2(%arg0: i32, %arg1: i32, %arg2: i32) -> (i32, i32) {
    %c0_i32 = arith.constant 0 : i32
    return %arg0, %arg1 : i32, i32
  }
}

module attributes {stable_mosaic.version = 11 : i64} {
  func.func @_matmul_kernel(%arg0: i32, %arg1: i32, %arg2: i32, %arg3: memref<128x128xbf16, #tpu.memory_space<vmem>>, %arg4: memref<128x128xbf16, #tpu.memory_space<vmem>>, %arg5: memref<1x128xf32, #tpu.memory_space<vmem>>, %arg6: memref<128x128xf32, #tpu.memory_space<vmem>>, %arg7: memref<128x128xf32, #tpu.memory_space<vmem>>) attributes {dimension_semantics = [#tpu.dimension_semantics<parallel>, #tpu.dimension_semantics<parallel>, #tpu.dimension_semantics<arbitrary>], iteration_bounds = array<i64: 1, 1, 1>, scalar_prefetch = 0 : i64, scratch_operands = 1 : i64, tpu.core_type = #tpu.core_type<tc>, window_params = [{transform_indices = @transform_0, window_bounds = array<i64: 128, 128>}, {transform_indices = @transform_1, window_bounds = array<i64: 128, 128>}, {transform_indices = @transform_2, window_bounds = array<i64: 1, 128>}, {transform_indices = @transform_3, window_bounds = array<i64: 128, 128>}]} {
    %c0_i32 = arith.constant 0 : i32
    %0 = arith.cmpi eq, %arg2, %c0_i32 : i32
    %1 = arith.extui %0 : i1 to i32
    %c0_i32_0 = arith.constant 0 : i32
    %2 = arith.cmpi ne, %1, %c0_i32_0 : i32
    scf.if %2 {
      %cst_10 = arith.constant 0.000000e+00 : f32
      %12 = vector.broadcast %cst_10 : f32 to vector<128x128xf32>
      %c0_11 = arith.constant 0 : index
      %c0_12 = arith.constant 0 : index
      %13 = vector.load %arg7[%c0_11, %c0_12] : memref<128x128xf32, #tpu.memory_space<vmem>>, vector<128x128xf32>
      tpu.vector_store %arg7[%c0_11, %c0_12], %12 {strides = array<i32>} : memref<128x128xf32, #tpu.memory_space<vmem>>, vector<128x128xf32>,
    } else {
    }
    %c0 = arith.constant 0 : index
    %c0_1 = arith.constant 0 : index
    %3 = vector.load %arg7[%c0, %c0_1] : memref<128x128xf32, #tpu.memory_space<vmem>>, vector<128x128xf32>
    %c0_2 = arith.constant 0 : index
    %c0_3 = arith.constant 0 : index
    %4 = vector.load %arg3[%c0_2, %c0_3] : memref<128x128xbf16, #tpu.memory_space<vmem>>, vector<128x128xbf16>
    %c0_4 = arith.constant 0 : index
    %c0_5 = arith.constant 0 : index
    %5 = vector.load %arg4[%c0_4, %c0_5] : memref<128x128xbf16, #tpu.memory_space<vmem>>, vector<128x128xbf16>
    %cst = arith.constant dense<0.000000e+00> : vector<128x128xf32>
    %6 = tpu.matmul %4, %5, %cst {dimension_numbers = #tpu.dot_dimension_numbers<[1], [0], [0], [1], [0, 0, 1, 1], [], []>} : vector<128x128xbf16>, vector<128x128xbf16>, vector<128x128xf32> -> vector<128x128xf32>
    %7 = arith.addf %3, %6 : vector<128x128xf32>
    %c0_6 = arith.constant 0 : index
    %c0_7 = arith.constant 0 : index
    %8 = vector.load %arg7[%c0_6, %c0_7] : memref<128x128xf32, #tpu.memory_space<vmem>>, vector<128x128xf32>
    tpu.vector_store %arg7[%c0_6, %c0_7], %7 {strides = array<i32>} : memref<128x128xf32, #tpu.memory_space<vmem>>, vector<128x128xf32>,
    %c0_i32_8 = arith.constant 0 : i32
    %9 = arith.cmpi eq, %arg2, %c0_i32_8 : i32
    %10 = arith.extui %9 : i1 to i32
    %c0_i32_9 = arith.constant 0 : i32
    %11 = arith.cmpi ne, %10, %c0_i32_9 : i32
    scf.if %11 {
      %c0_10 = arith.constant 0 : index
      %c0_11 = arith.constant 0 : index
      %12 = vector.load %arg7[%c0_10, %c0_11] : memref<128x128xf32, #tpu.memory_space<vmem>>, vector<128x128xf32>
      %c0_12 = arith.constant 0 : index
      %c0_13 = arith.constant 0 : index
      %13 = vector.load %arg5[%c0_12, %c0_13] : memref<1x128xf32, #tpu.memory_space<vmem>>, vector<1x128xf32>
      %14 = vector.broadcast %13 : vector<1x128xf32> to vector<128x128xf32>
      %15 = arith.addf %12, %14 : vector<128x128xf32>
      %c0_14 = arith.constant 0 : index
      %c0_15 = arith.constant 0 : index
      %16 = vector.load %arg6[%c0_14, %c0_15] : memref<128x128xf32, #tpu.memory_space<vmem>>, vector<128x128xf32>
      tpu.vector_store %arg6[%c0_14, %c0_15], %15 {strides = array<i32>} : memref<128x128xf32, #tpu.memory_space<vmem>>, vector<128x128xf32>,
    } else {
    }
    return
  }
  func.func @transform_0(%arg0: i32, %arg1: i32, %arg2: i32) -> (i32, i32) {
    %c0_i32 = arith.constant 0 : i32
    return %arg0, %arg2 : i32, i32
  }
  func.func @transform_1(%arg0: i32, %arg1: i32, %arg2: i32) -> (i32, i32) {
    %c0_i32 = arith.constant 0 : i32
    return %arg2, %arg1 : i32, i32
  }
  func.func @transform_2(%arg0: i32, %arg1: i32, %arg2: i32) -> (i32, i32) {
    %c0_i32 = arith.constant 0 : i32
    %c0_i32_0 = arith.constant 0 : i32
    return %c0_i32, %arg1 : i32, i32
  }
  func.func @transform_3(%arg0: i32, %arg1: i32, %arg2: i32) -> (i32, i32) {
    %c0_i32 = arith.constant 0 : i32
    return %arg0, %arg1 : i32, i32
  }
}

</mosaic_0001>

<bundles_post_ra>
// kernel: _lambda_.9
= control target key start
LH: loop header
LB: loop body
LE: loop exit
PB: predicated region body
PF: predicated region fallthrough
CT: control target
= control target key end

     0   :  { %v332_v0 = vmov 0   ;;  %s494_s1 = inlined_call_operand.vmem [shape: f32[128,1], index: 1, kind: input, shape index: {}]   ;;  %s495_s0 = inlined_call_operand.vmem [shape: f32[128,128], index: 0, kind: input, shape index: {}]   ;;  %s496_s2 = inlined_call_operand.vmem [shape: f32[1,128], index: 2, kind: input, shape index: {}]   ;;  %s497_s3 = inlined_call_operand.vmem [shape: bf16[128,128], index: 3, kind: output, shape index: {}]  }
   0x1   :  { %331 = vset.pattern.permute.xlu1 %v332_v0  ;;  %330 = vset.pattern.permute.xlu0 %v332_v0  ;;  %v32_v1 = vld [vmem:[%s494_s1 + $0x10] sm:$0xff]  ;;  %v30_v2 = vld [vmem:[%s494_s1] sm:$0xff]  ;;  %v33_v3 = vld [vmem:[%s494_s1 + $0x18] sm:$0xff] }
   0x2   :  { %58 = vperm.xlu1 %331, %v32_v1   ;;  %48 = vperm.xlu0 %330, %v30_v2   ;;  %v31_v4 = vld [vmem:[%s494_s1 + $0x8] sm:$0xff]  ;;  %v34_v6 = vld [vmem:[%s494_s1 + $0x20] sm:$0xff]  ;;  %v37_v7 = vld [vmem:[%s494_s1 + $0x38] sm:$0xff] }
   0x3   :  { %v35_v5 = vld [vmem:[%s494_s1 + $0x28] sm:$0xff]  ;;  %v36_v8 = vld [vmem:[%s494_s1 + $0x30] sm:$0xff]  ;;  %v38_v10 = vld [vmem:[%s494_s1 + $0x40] sm:$0xff] }
   0x4   :  { %v39_v9 = vld [vmem:[%s494_s1 + $0x48] sm:$0xff]  ;;  %v41_v11 = vld [vmem:[%s494_s1 + $0x58] sm:$0xff]  ;;  %v40_v12 = vld [vmem:[%s494_s1 + $0x50] sm:$0xff] }
   0x5   :  { %v43_v13 = vld [vmem:[%s494_s1 + $0x68] sm:$0xff]  ;;  %v42_v14 = vld [vmem:[%s494_s1 + $0x60] sm:$0xff]  ;;  %v45_v15 = vld [vmem:[%s494_s1 + $0x78] sm:$0xff] }
   0x6   :  { %63 = vperm.xlu1 %331, %v33_v3   ;;  %53 = vperm.xlu0 %330, %v31_v4   ;;  %v44_v16 = vld [vmem:[%s494_s1 + $0x70] sm:$0xff]  ;;  %v14_v20 = vld [vmem:[%s495_s0] sm:$0xff]  ;;  %v17_v21 = vld [vmem:[%s495_s0 + $0x18] sm:$0xff] }
   0x7   :  { %v16_v18 = vld [vmem:[%s495_s0 + $0x10] sm:$0xff]  ;;  %v15_v22 = vld [vmem:[%s495_s0 + $0x8] sm:$0xff]  ;;  %v416_v25 = vld [vmem:[%s496_s2] ss:$0 sm:$0xff] }
   0x8   :  { %v19_v30 = vld [vmem:[%s495_s0 + $0x28] sm:$0xff]  ;;  %v18_v31 = vld [vmem:[%s495_s0 + $0x20] sm:$0xff]  ;;  %v21_v42 = vld [vmem:[%s495_s0 + $0x38] sm:$0xff] }
   0x9   :  { %v20_v43 = vld [vmem:[%s495_s0 + $0x30] sm:$0xff]  ;;  %v23_v51 = vld [vmem:[%s495_s0 + $0x48] sm:$0xff]  ;;  %v22_v52 = vld [vmem:[%s495_s0 + $0x40] sm:$0xff] }
   0xa   :  { %73 = vperm.xlu1 %331, %v35_v5   ;;  %68 = vperm.xlu0 %330, %v34_v6   ;;  %v25_v60 = vld [vmem:[%s495_s0 + $0x58] sm:$0xff]  ;;  %v24_v61 = vld [vmem:[%s495_s0 + $0x50] sm:$0xff]  ;;  %v27_v5 = vld [vmem:[%s495_s0 + $0x68] sm:$0xff] }
   0xb   :  { %v26_v6 = vld [vmem:[%s495_s0 + $0x60] sm:$0xff] }
   0xe   :  { %83 = vperm.xlu1 %331, %v37_v7   ;;  %78 = vperm.xlu0 %330, %v36_v8  }
  0x12   :  { %93 = vperm.xlu1 %331, %v39_v9   ;;  %88 = vperm.xlu0 %330, %v38_v10  }
  0x16   :  { %103 = vperm.xlu1 %331, %v41_v11   ;;  %98 = vperm.xlu0 %330, %v40_v12  }
  0x1a   :  { %113 = vperm.xlu1 %331, %v43_v13   ;;  %108 = vperm.xlu0 %330, %v42_v14   ;;  %v29_v14 = vld [vmem:[%s495_s0 + $0x78] sm:$0xff] }
  0x1e   :  { %123 = vperm.xlu1 %331, %v45_v15   ;;  %118 = vperm.xlu0 %330, %v44_v16   ;;  %v28_v15 = vld [vmem:[%s495_s0 + $0x70] sm:$0xff] }
  0x81   :  { %v59_v17 = vpop.permute.xlu1 %58  ;;  %v49_v19 = vpop.permute.xlu0 %48 }
  0x82   :  { %v128_v23 = vmul.f32 %v59_v17, %v16_v18  ;;  %v126_v24 = vmul.f32 %v49_v19, %v14_v20 }
  0x84   :  { %v151_v32 = vmul.f32 %v416_v25, %v128_v23  ;;  %v149_v33 = vmul.f32 %v416_v25, %v126_v24 }
  0x85   :  { %v64_v26 = vpop.permute.xlu1 %63  ;;  %v54_v27 = vpop.permute.xlu0 %53 }
  0x86   :  { %v129_v28 = vmul.f32 %v64_v26, %v17_v21  ;;  %v127_v29 = vmul.f32 %v54_v27, %v15_v22 }
  0x88   :  { %v152_v34 = vmul.f32 %v416_v25, %v129_v28  ;;  %v150_v35 = vmul.f32 %v416_v25, %v127_v29 }
  0x89   :  { %v74_v36 = vpop.permute.xlu1 %73  ;;  %v69_v37 = vpop.permute.xlu0 %68 }
  0x8a   :  { %v290_v38 = vpack.c.bf16 %v152_v34, %v151_v32  ;;  %v285_v39 = vpack.c.bf16 %v150_v35, %v149_v33  ;;  %v131_v40 = vmul.f32 %v74_v36, %v19_v30  ;;  %v130_v41 = vmul.f32 %v69_v37, %v18_v31 }
  0x8c   :  { %322 = vst [vmem:[%s497_s3 + $0x8] sm:$0xff] %v290_v38   ;;  %286 = vst [vmem:[%s497_s3] sm:$0xff] %v285_v39   ;;  %v154_v44 = vmul.f32 %v416_v25, %v131_v40  ;;  %v153_v45 = vmul.f32 %v416_v25, %v130_v41 }
  0x8d   :  { %v84_v46 = vpop.permute.xlu1 %83  ;;  %v79_v47 = vpop.permute.xlu0 %78 }
  0x8e   :  { %v295_v48 = vpack.c.bf16 %v154_v44, %v153_v45  ;;  %v133_v49 = vmul.f32 %v84_v46, %v21_v42  ;;  %v132_v50 = vmul.f32 %v79_v47, %v20_v43 }
  0x90   :  { %323 = vst [vmem:[%s497_s3 + $0x10] sm:$0xff] %v295_v48   ;;  %v156_v53 = vmul.f32 %v416_v25, %v133_v49  ;;  %v155_v54 = vmul.f32 %v416_v25, %v132_v50 }
  0x91   :  { %v94_v55 = vpop.permute.xlu1 %93  ;;  %v89_v56 = vpop.permute.xlu0 %88 }
  0x92   :  { %v300_v57 = vpack.c.bf16 %v156_v53, %v155_v54  ;;  %v135_v58 = vmul.f32 %v94_v55, %v23_v51  ;;  %v134_v59 = vmul.f32 %v89_v56, %v22_v52 }
  0x94   :  { %324 = vst [vmem:[%s497_s3 + $0x18] sm:$0xff] %v300_v57   ;;  %v158_v62 = vmul.f32 %v416_v25, %v135_v58  ;;  %v157_v63 = vmul.f32 %v416_v25, %v134_v59 }
  0x95   :  { %v104_v0 = vpop.permute.xlu1 %103  ;;  %v99_v1 = vpop.permute.xlu0 %98 }
  0x96   :  { %v305_v2 = vpack.c.bf16 %v158_v62, %v157_v63  ;;  %v137_v3 = vmul.f32 %v104_v0, %v25_v60  ;;  %v136_v4 = vmul.f32 %v99_v1, %v24_v61 }
  0x98   :  { %325 = vst [vmem:[%s497_s3 + $0x20] sm:$0xff] %v305_v2   ;;  %v160_v7 = vmul.f32 %v416_v25, %v137_v3  ;;  %v159_v8 = vmul.f32 %v416_v25, %v136_v4 }
  0x99   :  { %v114_v9 = vpop.permute.xlu1 %113  ;;  %v109_v10 = vpop.permute.xlu0 %108 }
  0x9a   :  { %v310_v11 = vpack.c.bf16 %v160_v7, %v159_v8  ;;  %v139_v12 = vmul.f32 %v114_v9, %v27_v5  ;;  %v138_v13 = vmul.f32 %v109_v10, %v26_v6 }
  0x9c   :  { %326 = vst [vmem:[%s497_s3 + $0x28] sm:$0xff] %v310_v11   ;;  %v162_v16 = vmul.f32 %v416_v25, %v139_v12  ;;  %v161_v17 = vmul.f32 %v416_v25, %v138_v13 }
  0x9d   :  { %v124_v18 = vpop.permute.xlu1 %123  ;;  %v119_v19 = vpop.permute.xlu0 %118 }
  0x9e   :  { %v315_v20 = vpack.c.bf16 %v162_v16, %v161_v17  ;;  %v141_v21 = vmul.f32 %v124_v18, %v29_v14  ;;  %v140_v22 = vmul.f32 %v119_v19, %v28_v15 }
  0xa0   :  { %327 = vst [vmem:[%s497_s3 + $0x30] sm:$0xff] %v315_v20   ;;  %v164_v23 = vmul.f32 %v416_v25, %v141_v21  ;;  %v163_v24 = vmul.f32 %v416_v25, %v140_v22 }
  0xa2   :  { %v320_v26 = vpack.c.bf16 %v164_v23, %v163_v24 }
  0xa4   :  { %328 = vst [vmem:[%s497_s3 + $0x38] sm:$0xff] %v320_v26  }

// kernel: _lambda_.8
= control target key start
LH: loop header
LB: loop body
LE: loop exit
PB: predicated region body
PF: predicated region fallthrough
CT: control target
= control target key end

     0   :  { %vm16_vm0 = vcmask 7168   ;;  %v374_v1 = vmov 0.0   ;;  %s590_s0 = inlined_call_operand.vmem [shape: f32[128,128], index: 0, kind: input, shape index: {}]   ;;  %s591_s1 = inlined_call_operand.vmem [shape: f32[1,128], index: 1, kind: output, shape index: {0}]   ;;  %s592_s2 = inlined_call_operand.vmem [shape: f32[128,1], index: 2, kind: output, shape index: {1}]  }
   0x1   :  { %v39_v0 = vld [vmem:[%s590_s0 + $0x10] sm:$0xff]  ;;  %36 = vst [vmem:[#allocation2] sm:$0x1] %v374_v1  ;;  %v37_v2 = vld [vmem:[%s590_s0] sm:$0xff]  ;;  %v40_v3 = vld [vmem:[%s590_s0 + $0x18] sm:$0xff] }
   0x2   :  { %19 = vst.msk [vmem:[#allocation3 + $0x10] sm:$0xff] %vm16_vm0, %v374_v1  ;;  %17 = vst.msk [vmem:[#allocation3] sm:$0xff] %vm16_vm0, %v374_v1  ;;  %vm55_vm1 = vcmp.ne.f32.partialorder %v39_v0, 0.0  ;;  %vm53_vm2 = vcmp.ne.f32.partialorder %v37_v2, 0.0  ;;  %vm56_vm3 = vcmp.ne.f32.partialorder %v40_v3, 0.0  ;;  %v38_v4 = vld [vmem:[%s590_s0 + $0x8] sm:$0xff] }
   0x3   :  { %18 = vst.msk [vmem:[#allocation3 + $0x8] sm:$0xff] %vm16_vm0, %v374_v1  ;;  %20 = vst.msk [vmem:[#allocation3 + $0x18] sm:$0xff] %vm16_vm0, %v374_v1  ;;  %v325_v5 = vsel %vm55_vm1, 1.0, %v374_v1  ;;  %v323_v6 = vsel %vm53_vm2, 1.0, %v374_v1  ;;  %vm54_vm4 = vcmp.ne.f32.partialorder %v38_v4, 0.0  ;;  %v42_v7 = vld [vmem:[%s590_s0 + $0x28] sm:$0xff] }
   0x4   :  { %21 = vst.msk [vmem:[#allocation3 + $0x20] sm:$0xff] %vm16_vm0, %v374_v1  ;;  %22 = vst.msk [vmem:[#allocation3 + $0x28] sm:$0xff] %vm16_vm0, %v374_v1  ;;  %v41_v8 = vld [vmem:[%s590_s0 + $0x20] sm:$0xff]  ;;  %129 = vadd.xlane.f32.xlu1 %v325_v5  ;;  %125 = vadd.xlane.f32.xlu0 %v323_v6  ;;  %v324_v9 = vsel %vm54_vm4, 1.0, %v374_v1  ;;  %v326_v10 = vsel %vm56_vm3, 1.0, %v374_v1  ;;  %vm58_vm5 = vcmp.ne.f32.partialorder %v42_v7, 0.0 }
   0x5   :  { %23 = vst.msk [vmem:[#allocation3 + $0x30] sm:$0xff] %vm16_vm0, %v374_v1  ;;  %24 = vst.msk [vmem:[#allocation3 + $0x38] sm:$0xff] %vm16_vm0, %v374_v1  ;;  %v102_v11 = vadd.f32 %v324_v9, %v323_v6  ;;  %vm57_vm6 = vcmp.ne.f32.partialorder %v41_v8, 0.0  ;;  %v44_v13 = vld [vmem:[%s590_s0 + $0x38] sm:$0xff]  ;;  %v43_v14 = vld [vmem:[%s590_s0 + $0x30] sm:$0xff]  ;;  %v328_v15 = vsel %vm58_vm5, 1.0, %v374_v1 }
   0x6   :  { %25 = vst.msk [vmem:[#allocation3 + $0x40] sm:$0xff] %vm16_vm0, %v374_v1  ;;  %26 = vst.msk [vmem:[#allocation3 + $0x48] sm:$0xff] %vm16_vm0, %v374_v1  ;;  %v327_v16 = vsel %vm57_vm6, 1.0, %v374_v1  ;;  %vm60_vm7 = vcmp.ne.f32.partialorder %v44_v13, 0.0  ;;  %vm59_vm8 = vcmp.ne.f32.partialorder %v43_v14, 0.0  ;;  %v46_v19 = vld [vmem:[%s590_s0 + $0x48] sm:$0xff] }
   0x7   :  { %27 = vst.msk [vmem:[#allocation3 + $0x50] sm:$0xff] %vm16_vm0, %v374_v1  ;;  %28 = vst.msk [vmem:[#allocation3 + $0x58] sm:$0xff] %vm16_vm0, %v374_v1  ;;  %v103_v12 = vadd.f32 %v325_v5, %v102_v11  ;;  %v45_v20 = vld [vmem:[%s590_s0 + $0x40] sm:$0xff]  ;;  %v330_v21 = vsel %vm60_vm7, 1.0, %v374_v1  ;;  %v329_v22 = vsel %vm59_vm8, 1.0, %v374_v1  ;;  %vm62_vm9 = vcmp.ne.f32.partialorder %v46_v19, 0.0 }
   0x8   :  { %29 = vst.msk [vmem:[#allocation3 + $0x60] sm:$0xff] %vm16_vm0, %v374_v1  ;;  %30 = vst.msk [vmem:[#allocation3 + $0x68] sm:$0xff] %vm16_vm0, %v374_v1  ;;  %131 = vadd.xlane.f32.xlu1 %v326_v10  ;;  %127 = vadd.xlane.f32.xlu0 %v324_v9  ;;  %vm61_vm10 = vcmp.ne.f32.partialorder %v45_v20, 0.0  ;;  %v48_v25 = vld [vmem:[%s590_s0 + $0x58] sm:$0xff]  ;;  %v47_v26 = vld [vmem:[%s590_s0 + $0x50] sm:$0xff]  ;;  %v332_v27 = vsel %vm62_vm9, 1.0, %v374_v1 }
   0x9   :  { %31 = vst.msk [vmem:[#allocation3 + $0x70] sm:$0xff] %vm16_vm0, %v374_v1  ;;  %32 = vst.msk [vmem:[#allocation3 + $0x78] sm:$0xff] %vm16_vm0, %v374_v1  ;;  %v104_v17 = vadd.f32 %v326_v10, %v103_v12  ;;  %v331_v28 = vsel %vm61_vm10, 1.0, %v374_v1  ;;  %vm64_vm11 = vcmp.ne.f32.partialorder %v48_v25, 0.0  ;;  %vm63_vm12 = vcmp.ne.f32.partialorder %v47_v26, 0.0  ;;  %v50_v31 = vld [vmem:[%s590_s0 + $0x68] sm:$0xff] }
   0xa   :  { %v49_v32 = vld [vmem:[%s590_s0 + $0x60] sm:$0xff]  ;;  %v334_v33 = vsel %vm64_vm11, 1.0, %v374_v1  ;;  %v333_v34 = vsel %vm63_vm12, 1.0, %v374_v1  ;;  %vm66_vm13 = vcmp.ne.f32.partialorder %v50_v31, 0.0  ;;  %v52_v37 = vld [vmem:[%s590_s0 + $0x78] sm:$0xff]  ;;  %v51_v38 = vld [vmem:[%s590_s0 + $0x70] sm:$0xff] }
   0xb   :  { %v105_v18 = vadd.f32 %v327_v16, %v104_v17  ;;  %vm65_vm14 = vcmp.ne.f32.partialorder %v49_v32, 0.0  ;;  %v336_v39 = vsel %vm66_vm13, 1.0, %v374_v1  ;;  %vm68_vm15 = vcmp.ne.f32.partialorder %v52_v37, 0.0  ;;  %v101_v53 = vld [vmem:[#allocation2] sm:$0x1]  ;;  %v161_v60 = vld [vmem:[#allocation3 + $0x10] sm:$0xff] }
   0xc   :  { %135 = vadd.xlane.f32.xlu1 %v328_v15  ;;  %133 = vadd.xlane.f32.xlu0 %v327_v16  ;;  %v335_v40 = vsel %vm65_vm14, 1.0, %v374_v1  ;;  %vm67_vm1 = vcmp.ne.f32.partialorder %v51_v38, 0.0  ;;  %v338_v43 = vsel %vm68_vm15, 1.0, %v374_v1  ;;  %v159_v61 = vld [vmem:[#allocation3] sm:$0xff]  ;;  %v162_v2 = vld [vmem:[#allocation3 + $0x18] sm:$0xff]  ;;  %v160_v3 = vld [vmem:[#allocation3 + $0x8] sm:$0xff] }
   0xd   :  { %v106_v23 = vadd.f32 %v328_v15, %v105_v18  ;;  %v337_v44 = vsel %vm67_vm1, 1.0, %v374_v1  ;;  %v164_v8 = vld [vmem:[#allocation3 + $0x28] sm:$0xff]  ;;  %v163_v9 = vld [vmem:[#allocation3 + $0x20] sm:$0xff]  ;;  %v166_v14 = vld [vmem:[#allocation3 + $0x38] sm:$0xff] }
   0xe   :  { %v165_v17 = vld [vmem:[#allocation3 + $0x30] sm:$0xff] }
   0xf   :  { %v107_v24 = vadd.f32 %v329_v22, %v106_v23  ;;  %v169_v37 = vld [vmem:[#allocation3 + $0x50] sm:$0xff] }
  0x10   :  { %139 = vadd.xlane.f32.xlu1 %v330_v21  ;;  %137 = vadd.xlane.f32.xlu0 %v329_v22 }
  0x11   :  { %v108_v29 = vadd.f32 %v330_v21, %v107_v24  ;;  %v168_v24 = vld [vmem:[#allocation3 + $0x48] sm:$0xff] }
  0x13   :  { %v109_v30 = vadd.f32 %v331_v28, %v108_v29 }
  0x14   :  { %143 = vadd.xlane.f32.xlu1 %v332_v27  ;;  %141 = vadd.xlane.f32.xlu0 %v331_v28 }
  0x15   :  { %v110_v35 = vadd.f32 %v332_v27, %v109_v30  ;;  %v167_v27 = vld [vmem:[#allocation3 + $0x40] sm:$0xff] }
  0x17   :  { %v111_v36 = vadd.f32 %v333_v34, %v110_v35 }
  0x18   :  { %147 = vadd.xlane.f32.xlu1 %v334_v33  ;;  %145 = vadd.xlane.f32.xlu0 %v333_v34  ;;  %v170_v34 = vld [vmem:[#allocation3 + $0x58] sm:$0xff] }
  0x19   :  { %v112_v41 = vadd.f32 %v334_v33, %v111_v36 }
  0x1b   :  { %v113_v42 = vadd.f32 %v335_v40, %v112_v41 }
  0x1c   :  { %151 = vadd.xlane.f32.xlu1 %v336_v39  ;;  %149 = vadd.xlane.f32.xlu0 %v335_v40 }
  0x1d   :  { %v114_v45 = vadd.f32 %v336_v39, %v113_v42 }
  0x1f   :  { %v115_v46 = vadd.f32 %v337_v44, %v114_v45 }
  0x20   :  { %155 = vadd.xlane.f32.xlu1 %v338_v43  ;;  %153 = vadd.xlane.f32.xlu0 %v337_v44  ;;  %v172_v44 = vld [vmem:[#allocation3 + $0x68] sm:$0xff] }
  0x21   :  { %v116_v47 = vadd.f32 %v338_v43, %v115_v46 }
  0x23   :  { %v117_v48 = vrot.slane %v116_v47, 4 }
  0x25   :  { %v118_v49 = vadd.f32 %v117_v48, %v116_v47  ;;  %v171_v47 = vld [vmem:[#allocation3 + $0x60] sm:$0xff] }
  0x27   :  { %v119_v50 = vrot.slane %v118_v49, 2 }
  0x29   :  { %v120_v51 = vadd.f32 %v119_v50, %v118_v49 }
  0x2b   :  { %v121_v52 = vrot.slane %v120_v51, 1 }
  0x2d   :  { %v122_v54 = vadd.f32 %v121_v52, %v120_v51 }
  0x2f   :  { %v123_v55 = vadd.f32 %v122_v54, %v101_v53 }
  0x31   :  { %124 = vst [vmem:[#allocation2] sm:$0x1] %v123_v55 }
  0x38   :  { %v211_v56 = vld [vmem:[#allocation2] sm:$0x1] }
  0x39   :  { %v213_v57 = vmax.f32 %v211_v56, 1.0  ;;  %vm212_vm2 = vcmp.gt.f32.partialorder %v211_v56, 0.0 }
  0x3b   :  { %340 = vrsqrt.f32 %v213_v57 }
  0x45   :  { %v341_v58 = vpop.eup %340 }
  0x46   :  { %v215_v59 = vsel %vm212_vm2, %v341_v58, 0.0  ;;  %v174_v58 = vld [vmem:[#allocation3 + $0x78] sm:$0xff] }
  0x47   :  { %216 = vst [vmem:[%s591_s1] sm:$0x1] %v215_v59 }
  0x91   :  { %v130_v62 = vpop.xlane.xlu1 %129  ;;  %v126_v63 = vpop.xlane.xlu0 %125 }
  0x92   :  { %v177_v0 = vadd.f32 %v161_v60, %v130_v62  ;;  %v175_v1 = vadd.f32 %v159_v61, %v126_v63  ;;  %v173_v61 = vld [vmem:[#allocation3 + $0x70] sm:$0xff] }
  0x94   :  { %194 = vst.msk [vmem:[#allocation3 + $0x10] sm:$0xff] %vm16_vm0, %v177_v0  ;;  %192 = vst.msk [vmem:[#allocation3] sm:$0xff] %vm16_vm0, %v175_v1 }
  0x95   :  { %v132_v4 = vpop.xlane.xlu1 %131  ;;  %v128_v5 = vpop.xlane.xlu0 %127 }
  0x96   :  { %v178_v6 = vadd.f32 %v162_v2, %v132_v4  ;;  %v176_v7 = vadd.f32 %v160_v3, %v128_v5 }
  0x98   :  { %195 = vst.msk [vmem:[#allocation3 + $0x18] sm:$0xff] %vm16_vm0, %v178_v6  ;;  %193 = vst.msk [vmem:[#allocation3 + $0x8] sm:$0xff] %vm16_vm0, %v176_v7 }
  0x99   :  { %v136_v10 = vpop.xlane.xlu1 %135  ;;  %v134_v11 = vpop.xlane.xlu0 %133 }
  0x9a   :  { %v180_v12 = vadd.f32 %v164_v8, %v136_v10  ;;  %v179_v13 = vadd.f32 %v163_v9, %v134_v11 }
  0x9b   :  { %v221_v15 = vld [vmem:[#allocation3 + $0x10] sm:$0xff]  ;;  %v219_v16 = vld [vmem:[#allocation3] sm:$0xff] }
  0x9c   :  { %v253_v18 = vmax.f32 %v221_v15, 1.0  ;;  %v251_v19 = vmax.f32 %v219_v16, 1.0  ;;  %197 = vst.msk [vmem:[#allocation3 + $0x28] sm:$0xff] %vm16_vm0, %v180_v12  ;;  %196 = vst.msk [vmem:[#allocation3 + $0x20] sm:$0xff] %vm16_vm0, %v179_v13  ;;  %vm237_vm3 = vcmp.gt.f32.partialorder %v221_v15, 0.0  ;;  %vm235_vm4 = vcmp.gt.f32.partialorder %v219_v16, 0.0 }
  0x9d   :  { %v140_v20 = vpop.xlane.xlu1 %139  ;;  %v138_v21 = vpop.xlane.xlu0 %137 }
  0x9e   :  { %342 = vrsqrt.f32 %v253_v18  ;;  %v182_v22 = vadd.f32 %v166_v14, %v140_v20  ;;  %v181_v23 = vadd.f32 %v165_v17, %v138_v21 }
  0x9f   :  { %344 = vrsqrt.f32 %v251_v19  ;;  %v222_v25 = vld [vmem:[#allocation3 + $0x18] sm:$0xff]  ;;  %v496_v26 = vld [vmem:[#allocation3 + $0x8] sm:$0xff] }
  0xa0   :  { %v254_v28 = vmax.f32 %v222_v25, 1.0  ;;  %v252_v29 = vmax.f32 %v496_v26, 1.0  ;;  %199 = vst.msk [vmem:[#allocation3 + $0x38] sm:$0xff] %vm16_vm0, %v182_v22  ;;  %198 = vst.msk [vmem:[#allocation3 + $0x30] sm:$0xff] %vm16_vm0, %v181_v23  ;;  %vm238_vm5 = vcmp.gt.f32.partialorder %v222_v25, 0.0  ;;  %vm236_vm6 = vcmp.gt.f32.partialorder %v496_v26, 0.0 }
  0xa1   :  { %v144_v30 = vpop.xlane.xlu1 %143  ;;  %v142_v31 = vpop.xlane.xlu0 %141 }
  0xa2   :  { %346 = vrsqrt.f32 %v254_v28  ;;  %v184_v32 = vadd.f32 %v168_v24, %v144_v30  ;;  %v183_v33 = vadd.f32 %v167_v27, %v142_v31 }
  0xa3   :  { %348 = vrsqrt.f32 %v252_v29  ;;  %v501_v35 = vld [vmem:[#allocation3 + $0x28] sm:$0xff]  ;;  %v503_v36 = vld [vmem:[#allocation3 + $0x20] sm:$0xff] }
  0xa4   :  { %v256_v38 = vmax.f32 %v501_v35, 1.0  ;;  %v255_v39 = vmax.f32 %v503_v36, 1.0  ;;  %201 = vst.msk [vmem:[#allocation3 + $0x48] sm:$0xff] %vm16_vm0, %v184_v32  ;;  %200 = vst.msk [vmem:[#allocation3 + $0x40] sm:$0xff] %vm16_vm0, %v183_v33  ;;  %vm240_vm7 = vcmp.gt.f32.partialorder %v501_v35, 0.0  ;;  %vm239_vm8 = vcmp.gt.f32.partialorder %v503_v36, 0.0 }
  0xa5   :  { %v148_v40 = vpop.xlane.xlu1 %147  ;;  %v146_v41 = vpop.xlane.xlu0 %145 }
  0xa6   :  { %350 = vrsqrt.f32 %v256_v38  ;;  %v186_v42 = vadd.f32 %v170_v34, %v148_v40  ;;  %v185_v43 = vadd.f32 %v169_v37, %v146_v41 }
  0xa7   :  { %352 = vrsqrt.f32 %v255_v39  ;;  %v509_v45 = vld [vmem:[#allocation3 + $0x38] sm:$0xff]  ;;  %v511_v46 = vld [vmem:[#allocation3 + $0x30] sm:$0xff] }
  0xa8   :  { %v343_v48 = vpop.eup %342  ;;  %v258_v49 = vmax.f32 %v509_v45, 1.0  ;;  %v257_v50 = vmax.f32 %v511_v46, 1.0  ;;  %203 = vst.msk [vmem:[#allocation3 + $0x58] sm:$0xff] %vm16_vm0, %v186_v42  ;;  %202 = vst.msk [vmem:[#allocation3 + $0x50] sm:$0xff] %vm16_vm0, %v185_v43  ;;  %vm242_vm9 = vcmp.gt.f32.partialorder %v509_v45, 0.0  ;;  %vm241_vm10 = vcmp.gt.f32.partialorder %v511_v46, 0.0 }
  0xa9   :  { %v345_v51 = vpop.eup %344  ;;  %v285_v52 = vsel %vm237_vm3, %v343_v48, 0.0  ;;  %v152_v53 = vpop.xlane.xlu1 %151 }
  0xaa   :  { %v150_v54 = vpop.xlane.xlu0 %149  ;;  %301 = vst.msk [vmem:[%s592_s2 + $0x10] sm:$0xff] %vm16_vm0, %v285_v52  ;;  %v283_v55 = vsel %vm235_vm4, %v345_v51, 0.0  ;;  %354 = vrsqrt.f32 %v258_v49  ;;  %v188_v56 = vadd.f32 %v172_v44, %v152_v53 }
  0xab   :  { %v187_v57 = vadd.f32 %v171_v47, %v150_v54  ;;  %299 = vst.msk [vmem:[%s592_s2] sm:$0xff] %vm16_vm0, %v283_v55  ;;  %356 = vrsqrt.f32 %v257_v50  ;;  %v228_v59 = vld [vmem:[#allocation3 + $0x48] sm:$0xff]  ;;  %v227_v60 = vld [vmem:[#allocation3 + $0x40] sm:$0xff] }
  0xac   :  { %v347_v62 = vpop.eup %346  ;;  %v260_v63 = vmax.f32 %v228_v59, 1.0  ;;  %v259_v0 = vmax.f32 %v227_v60, 1.0  ;;  %205 = vst.msk [vmem:[#allocation3 + $0x68] sm:$0xff] %vm16_vm0, %v188_v56  ;;  %vm244_vm11 = vcmp.gt.f32.partialorder %v228_v59, 0.0  ;;  %vm243_vm12 = vcmp.gt.f32.partialorder %v227_v60, 0.0 }
  0xad   :  { %204 = vst.msk [vmem:[#allocation3 + $0x60] sm:$0xff] %vm16_vm0, %v187_v57  ;;  %v349_v1 = vpop.eup %348  ;;  %v286_v2 = vsel %vm238_vm5, %v347_v62, 0.0  ;;  %v156_v3 = vpop.xlane.xlu1 %155 }
  0xae   :  { %v154_v4 = vpop.xlane.xlu0 %153  ;;  %302 = vst.msk [vmem:[%s592_s2 + $0x18] sm:$0xff] %vm16_vm0, %v286_v2  ;;  %v284_v5 = vsel %vm236_vm6, %v349_v1, 0.0  ;;  %358 = vrsqrt.f32 %v260_v63  ;;  %v190_v6 = vadd.f32 %v174_v58, %v156_v3 }
  0xaf   :  { %v189_v7 = vadd.f32 %v173_v61, %v154_v4  ;;  %300 = vst.msk [vmem:[%s592_s2 + $0x8] sm:$0xff] %vm16_vm0, %v284_v5  ;;  %360 = vrsqrt.f32 %v259_v0  ;;  %v230_v8 = vld [vmem:[#allocation3 + $0x58] sm:$0xff]  ;;  %v229_v9 = vld [vmem:[#allocation3 + $0x50] sm:$0xff] }
  0xb0   :  { %v351_v10 = vpop.eup %350  ;;  %v262_v11 = vmax.f32 %v230_v8, 1.0  ;;  %v261_v12 = vmax.f32 %v229_v9, 1.0  ;;  %207 = vst.msk [vmem:[#allocation3 + $0x78] sm:$0xff] %vm16_vm0, %v190_v6  ;;  %vm246_vm13 = vcmp.gt.f32.partialorder %v230_v8, 0.0  ;;  %vm245_vm14 = vcmp.gt.f32.partialorder %v229_v9, 0.0 }
  0xb1   :  { %206 = vst.msk [vmem:[#allocation3 + $0x70] sm:$0xff] %vm16_vm0, %v189_v7  ;;  %v353_v13 = vpop.eup %352  ;;  %v288_v14 = vsel %vm240_vm7, %v351_v10, 0.0 }
  0xb2   :  { %304 = vst.msk [vmem:[%s592_s2 + $0x28] sm:$0xff] %vm16_vm0, %v288_v14  ;;  %v287_v15 = vsel %vm239_vm8, %v353_v13, 0.0  ;;  %362 = vrsqrt.f32 %v262_v11 }
  0xb3   :  { %303 = vst.msk [vmem:[%s592_s2 + $0x20] sm:$0xff] %vm16_vm0, %v287_v15  ;;  %364 = vrsqrt.f32 %v261_v12  ;;  %v232_v16 = vld [vmem:[#allocation3 + $0x68] sm:$0xff] }
  0xb4   :  { %v231_v17 = vld [vmem:[#allocation3 + $0x60] sm:$0xff]  ;;  %v355_v18 = vpop.eup %354  ;;  %v264_v19 = vmax.f32 %v232_v16, 1.0  ;;  %vm248_vm15 = vcmp.gt.f32.partialorder %v232_v16, 0.0 }
  0xb5   :  { %v263_v20 = vmax.f32 %v231_v17, 1.0  ;;  %v357_v21 = vpop.eup %356  ;;  %v290_v22 = vsel %vm242_vm9, %v355_v18, 0.0  ;;  %vm247_vm1 = vcmp.gt.f32.partialorder %v231_v17, 0.0 }
  0xb6   :  { %306 = vst.msk [vmem:[%s592_s2 + $0x38] sm:$0xff] %vm16_vm0, %v290_v22  ;;  %v289_v23 = vsel %vm241_vm10, %v357_v21, 0.0  ;;  %366 = vrsqrt.f32 %v264_v19 }
  0xb7   :  { %305 = vst.msk [vmem:[%s592_s2 + $0x30] sm:$0xff] %vm16_vm0, %v289_v23  ;;  %368 = vrsqrt.f32 %v263_v20  ;;  %v234_v24 = vld [vmem:[#allocation3 + $0x78] sm:$0xff] }
  0xb8   :  { %v233_v25 = vld [vmem:[#allocation3 + $0x70] sm:$0xff]  ;;  %v359_v26 = vpop.eup %358  ;;  %v266_v27 = vmax.f32 %v234_v24, 1.0  ;;  %vm250_vm2 = vcmp.gt.f32.partialorder %v234_v24, 0.0 }
  0xb9   :  { %v265_v28 = vmax.f32 %v233_v25, 1.0  ;;  %v361_v29 = vpop.eup %360  ;;  %v292_v30 = vsel %vm244_vm11, %v359_v26, 0.0  ;;  %vm249_vm3 = vcmp.gt.f32.partialorder %v233_v25, 0.0 }
  0xba   :  { %308 = vst.msk [vmem:[%s592_s2 + $0x48] sm:$0xff] %vm16_vm0, %v292_v30  ;;  %v291_v31 = vsel %vm243_vm12, %v361_v29, 0.0  ;;  %370 = vrsqrt.f32 %v266_v27 }
  0xbb   :  { %307 = vst.msk [vmem:[%s592_s2 + $0x40] sm:$0xff] %vm16_vm0, %v291_v31  ;;  %372 = vrsqrt.f32 %v265_v28 }
  0xbc   :  { %v363_v32 = vpop.eup %362 }
  0xbd   :  { %v365_v33 = vpop.eup %364  ;;  %v294_v34 = vsel %vm246_vm13, %v363_v32, 0.0 }
  0xbe   :  { %310 = vst.msk [vmem:[%s592_s2 + $0x58] sm:$0xff] %vm16_vm0, %v294_v34  ;;  %v293_v35 = vsel %vm245_vm14, %v365_v33, 0.0 }
  0xbf   :  { %309 = vst.msk [vmem:[%s592_s2 + $0x50] sm:$0xff] %vm16_vm0, %v293_v35 }
  0xc0   :  { %v367_v36 = vpop.eup %366 }
  0xc1   :  { %v369_v37 = vpop.eup %368  ;;  %v296_v38 = vsel %vm248_vm15, %v367_v36, 0.0 }
  0xc2   :  { %312 = vst.msk [vmem:[%s592_s2 + $0x68] sm:$0xff] %vm16_vm0, %v296_v38  ;;  %v295_v39 = vsel %vm247_vm1, %v369_v37, 0.0 }
  0xc3   :  { %311 = vst.msk [vmem:[%s592_s2 + $0x60] sm:$0xff] %vm16_vm0, %v295_v39 }
  0xc4   :  { %v371_v40 = vpop.eup %370 }
  0xc5   :  { %v373_v41 = vpop.eup %372  ;;  %v298_v42 = vsel %vm250_vm2, %v371_v40, 0.0 }
  0xc6   :  { %314 = vst.msk [vmem:[%s592_s2 + $0x78] sm:$0xff] %vm16_vm0, %v298_v42  ;;  %v297_v43 = vsel %vm249_vm3, %v373_v41, 0.0 }
  0xc7   :  { %313 = vst.msk [vmem:[%s592_s2 + $0x70] sm:$0xff] %vm16_vm0, %v297_v43 }

// kernel: _lambda_.10
= control target key start
LH: loop header
LB: loop body
LE: loop exit
PB: predicated region body
PF: predicated region fallthrough
CT: control target
= control target key end

     0   :  { %s606_s1 = inlined_call_operand.vmem [shape: f32[128,128], index: 1, kind: input, shape index: {}]   ;;  %s607_s0 = inlined_call_operand.vmem [shape: f32[128,128], index: 0, kind: input, shape index: {}]   ;;  %s608_s2 = inlined_call_operand.vmem [shape: bf16[128,128], index: 2, kind: output, shape index: {}]  }
   0x1   :  { %v72_v0 = vld [vmem:[%s606_s1] sm:$0xff]  ;;  %v73_v1 = vld [vmem:[%s606_s1 + $0x8] sm:$0xff]  ;;  %v74_v2 = vld [vmem:[%s606_s1 + $0x10] sm:$0xff] }
   0x2   :  { %v88_v3 = vpack.c.bf16 %v73_v1, %v72_v0  ;;  %v75_v4 = vld [vmem:[%s606_s1 + $0x18] sm:$0xff]  ;;  %v76_v6 = vld [vmem:[%s606_s1 + $0x20] sm:$0xff]  ;;  %v77_v7 = vld [vmem:[%s606_s1 + $0x28] sm:$0xff] }
   0x3   :  { %v89_v5 = vpack.c.bf16 %v75_v4, %v74_v2  ;;  %v90_v8 = vpack.c.bf16 %v77_v7, %v76_v6  ;;  %v78_v9 = vld [vmem:[%s606_s1 + $0x30] sm:$0xff]  ;;  %v48_v10 = vld [vmem:[%s607_s0] sm:$0xff]  ;;  %v49_v11 = vld [vmem:[%s607_s0 + $0x8] sm:$0xff] }
   0x4   :  { %423 = vmatprep.subr.bf16.mxu0 %v88_v3  ;;  %455 = vmatprep.subr.bf16.mxu1 %v88_v3  ;;  %v79_v12 = vld [vmem:[%s606_s1 + $0x38] sm:$0xff]  ;;  %v64_v13 = vpack.c.bf16 %v49_v11, %v48_v10  ;;  %v56_v14 = vld [vmem:[%s607_s0 + $0x40] sm:$0xff]  ;;  %v57_v15 = vld [vmem:[%s607_s0 + $0x48] sm:$0xff] }
   0x5   :  { %424 = vmatpush3.bf16.msra.mxu0 %v88_v3  ;;  %463 = vmatpush3.bf16.msra.mxu1 %v88_v3  ;;  %v68_v16 = vpack.c.bf16 %v57_v15, %v56_v14  ;;  %v91_v17 = vpack.c.bf16 %v79_v12, %v78_v9  ;;  %v80_v18 = vld [vmem:[%s606_s1 + $0x40] sm:$0xff]  ;;  %v81_v19 = vld [vmem:[%s606_s1 + $0x48] sm:$0xff]  ;;  %v82_v21 = vld [vmem:[%s606_s1 + $0x50] sm:$0xff] }
   0x6   :  { %425 = vmatprep.subr.bf16.mxu0 %v89_v5  ;;  %456 = vmatprep.subr.bf16.mxu1 %v89_v5  ;;  %v92_v20 = vpack.c.bf16 %v81_v19, %v80_v18  ;;  %v83_v22 = vld [vmem:[%s606_s1 + $0x58] sm:$0xff]  ;;  %v84_v24 = vld [vmem:[%s606_s1 + $0x60] sm:$0xff]  ;;  %v85_v25 = vld [vmem:[%s606_s1 + $0x68] sm:$0xff] }
   0x7   :  { %439 = vmatprep.mubr.bf16.mxu0 %v64_v13  ;;  %447 = vmatprep.mubr.bf16.mxu1 %v68_v16  ;;  %v93_v23 = vpack.c.bf16 %v83_v22, %v82_v21  ;;  %v94_v26 = vpack.c.bf16 %v85_v25, %v84_v24  ;;  %v86_v27 = vld [vmem:[%s606_s1 + $0x70] sm:$0xff]  ;;  %v87_v28 = vld [vmem:[%s606_s1 + $0x78] sm:$0xff]  ;;  %v52_v34 = vld [vmem:[%s607_s0 + $0x20] sm:$0xff] }
   0x8   :  { %v95_v29 = vpack.c.bf16 %v87_v28, %v86_v27  ;;  %v50_v30 = vld [vmem:[%s607_s0 + $0x10] sm:$0xff]  ;;  %v51_v31 = vld [vmem:[%s607_s0 + $0x18] sm:$0xff]  ;;  %v53_v35 = vld [vmem:[%s607_s0 + $0x28] sm:$0xff] }
   0x9   :  { %426 = vmatpush3.bf16.msra.mxu0 %v89_v5  ;;  %464 = vmatpush3.bf16.msra.mxu1 %v89_v5  ;;  %v58_v32 = vld [vmem:[%s607_s0 + $0x50] sm:$0xff]  ;;  %v59_v33 = vld [vmem:[%s607_s0 + $0x58] sm:$0xff]  ;;  %v60_v36 = vld [vmem:[%s607_s0 + $0x60] sm:$0xff]  ;;  %v65_v38 = vpack.c.bf16 %v51_v31, %v50_v30  ;;  %v66_v40 = vpack.c.bf16 %v53_v35, %v52_v34 }
   0xa   :  { %427 = vmatprep.subr.bf16.mxu0 %v90_v8  ;;  %457 = vmatprep.subr.bf16.mxu1 %v90_v8  ;;  %v61_v37 = vld [vmem:[%s607_s0 + $0x68] sm:$0xff]  ;;  %v69_v39 = vpack.c.bf16 %v59_v33, %v58_v32  ;;  %v54_v42 = vld [vmem:[%s607_s0 + $0x30] sm:$0xff]  ;;  %v55_v43 = vld [vmem:[%s607_s0 + $0x38] sm:$0xff] }
   0xb   :  { %v70_v41 = vpack.c.bf16 %v61_v37, %v60_v36  ;;  %v62_v44 = vld [vmem:[%s607_s0 + $0x70] sm:$0xff]  ;;  %v63_v45 = vld [vmem:[%s607_s0 + $0x78] sm:$0xff]  ;;  %v67_v46 = vpack.c.bf16 %v55_v43, %v54_v42 }
   0xc   :  { %v71_v47 = vpack.c.bf16 %v63_v45, %v62_v44 }
   0xd   :  { %428 = vmatpush3.bf16.msra.mxu0 %v90_v8  ;;  %465 = vmatpush3.bf16.msra.mxu1 %v90_v8 }
   0xe   :  { %429 = vmatprep.subr.bf16.mxu0 %v91_v17  ;;  %458 = vmatprep.subr.bf16.mxu1 %v91_v17 }
  0x11   :  { %430 = vmatpush3.bf16.msra.mxu0 %v91_v17  ;;  %466 = vmatpush3.bf16.msra.mxu1 %v91_v17 }
  0x12   :  { %431 = vmatprep.subr.bf16.mxu0 %v92_v20  ;;  %459 = vmatprep.subr.bf16.mxu1 %v92_v20 }
  0x15   :  { %432 = vmatpush3.bf16.msra.mxu0 %v92_v20  ;;  %467 = vmatpush3.bf16.msra.mxu1 %v92_v20 }
  0x16   :  { %433 = vmatprep.subr.bf16.mxu0 %v93_v23  ;;  %460 = vmatprep.subr.bf16.mxu1 %v93_v23 }
  0x19   :  { %434 = vmatpush3.bf16.msra.mxu0 %v93_v23  ;;  %468 = vmatpush3.bf16.msra.mxu1 %v93_v23 }
  0x1a   :  { %435 = vmatprep.subr.bf16.mxu0 %v94_v26  ;;  %461 = vmatprep.subr.bf16.mxu1 %v94_v26 }
  0x1d   :  { %436 = vmatpush3.bf16.msra.mxu0 %v94_v26  ;;  %469 = vmatpush3.bf16.msra.mxu1 %v94_v26 }
  0x1e   :  { %437 = vmatprep.subr.bf16.mxu0 %v95_v29  ;;  %462 = vmatprep.subr.bf16.mxu1 %v95_v29 }
  0x21   :  { %438 = vmatpush3.bf16.msra.mxu0 %v95_v29  ;;  %470 = vmatpush3.bf16.msra.mxu1 %v95_v29 }
  0x24   :  { %440 = vmatmul.mubr.bf16.vlgmr.msra.gmra.mrb[0].mxu0 %v65_v38  ;;  %448 = vmatmul.mubr.bf16.vlgmr.msra.gmra.mrb[0].mxu1 %v69_v39 }
  0x25   :  { %443 = vmatprep.mubr.bf16.mxu0 %v66_v40  ;;  %451 = vmatprep.mubr.bf16.mxu1 %v70_v41 }
  0x2c   :  { %444 = vmatmul.mubr.bf16.gmra.mrb[4].mxu0 %v67_v46  ;;  %452 = vmatmul.mubr.bf16.gmra.mrb[4].mxu1 %v71_v47 }
  0xf7   :  { %v441_v48 = vpop.f32.mrb[0].mxu0  ;;  %v449_v49 = vpop.f32.mrb[0].mxu1 }
  0xf8   :  { %v130_v50 = vpop.f32.mrb[1].mxu0  ;;  %v162_v51 = vpop.f32.mrb[1].mxu1 }
  0xf9   :  { %v442_v52 = vpop.f32.mrb[2].mxu0  ;;  %v450_v53 = vpop.f32.mrb[2].mxu1 }
  0xfa   :  { %v368_v54 = vpack.c.bf16 %v442_v52, %v441_v48  ;;  %v388_v55 = vpack.c.bf16 %v450_v53, %v449_v49  ;;  %v133_v56 = vpop.f32.mrb[3].mxu0  ;;  %v165_v57 = vpop.f32.mrb[3].mxu1 }
  0xfb   :  { %v363_v58 = vpack.c.bf16 %v133_v56, %v130_v50  ;;  %v383_v59 = vpack.c.bf16 %v165_v57, %v162_v51 }
  0xfc   :  { %400 = vst [vmem:[%s608_s2 + $0x8] sm:$0xff] %v368_v54   ;;  %404 = vst [vmem:[%s608_s2 + $0x28] sm:$0xff] %v388_v55  }
  0xfd   :  { %364 = vst [vmem:[%s608_s2] sm:$0xff] %v363_v58   ;;  %403 = vst [vmem:[%s608_s2 + $0x20] sm:$0xff] %v383_v59  }
  0xff   :  { %v445_v60 = vpop.f32.mrb[4].mxu0  ;;  %v453_v61 = vpop.f32.mrb[4].mxu1 }
 0x100   :  { %v146_v62 = vpop.f32.mrb[5].mxu0  ;;  %v178_v63 = vpop.f32.mrb[5].mxu1 }
 0x101   :  { %v446_v0 = vpop.f32.mrb[6].mxu0  ;;  %v454_v1 = vpop.f32.mrb[6].mxu1 }
 0x102   :  { %v378_v2 = vpack.c.bf16 %v446_v0, %v445_v60  ;;  %v398_v3 = vpack.c.bf16 %v454_v1, %v453_v61  ;;  %v149_v4 = vpop.f32.mrb[7].mxu0  ;;  %v181_v5 = vpop.f32.mrb[7].mxu1 }
 0x103   :  { %v373_v6 = vpack.c.bf16 %v149_v4, %v146_v62  ;;  %v393_v7 = vpack.c.bf16 %v181_v5, %v178_v63 }
 0x104   :  { %402 = vst [vmem:[%s608_s2 + $0x18] sm:$0xff] %v378_v2   ;;  %406 = vst [vmem:[%s608_s2 + $0x38] sm:$0xff] %v398_v3  }
 0x105   :  { %401 = vst [vmem:[%s608_s2 + $0x10] sm:$0xff] %v373_v6   ;;  %405 = vst [vmem:[%s608_s2 + $0x30] sm:$0xff] %v393_v7  }

// kernel: _lambda_.11
= control target key start
LH: loop header
LB: loop body
LE: loop exit
PB: predicated region body
PF: predicated region fallthrough
CT: control target
= control target key end

     0   :  { %s721_s1 = inlined_call_operand.vmem [shape: bf16[128,128], index: 1, kind: input, shape index: {}]   ;;  %s722_s0 = inlined_call_operand.vmem [shape: bf16[128,128], index: 0, kind: input, shape index: {}]   ;;  %s723_s2 = inlined_call_operand.vmem [shape: f32[1,128], index: 2, kind: input, shape index: {}]   ;;  %s724_s3 = inlined_call_operand.vmem [shape: bf16[128,128], index: 3, kind: output, shape index: {}]  }
   0x1   :  { %v610_v0 = vld [vmem:[%s721_s1] sm:$0xff]   ;;  %v611_v1 = vld [vmem:[%s721_s1 + $0x8] sm:$0xff]   ;;  %v612_v2 = vld [vmem:[%s721_s1 + $0x10] sm:$0xff]  }
   0x2   :  { %562 = vmatprep.subr.bf16.mxu0 %v610_v0  ;;  %594 = vmatprep.subr.bf16.mxu1 %v610_v0  ;;  %v613_v3 = vld [vmem:[%s721_s1 + $0x18] sm:$0xff]   ;;  %v618_v4 = vld [vmem:[%s722_s0] sm:$0xff]   ;;  %v615_v7 = vld [vmem:[%s721_s1 + $0x28] sm:$0xff]  }
   0x3   :  { %563 = vmatpush3.bf16.msra.mxu0 %v610_v0  ;;  %602 = vmatpush3.bf16.msra.mxu1 %v610_v0  ;;  %v619_v5 = vld [vmem:[%s722_s0 + $0x20] sm:$0xff]   ;;  %v616_v8 = vld [vmem:[%s721_s1 + $0x30] sm:$0xff]   ;;  %v617_v9 = vld [vmem:[%s721_s1 + $0x38] sm:$0xff]  }
   0x4   :  { %564 = vmatprep.subr.bf16.mxu0 %v611_v1  ;;  %595 = vmatprep.subr.bf16.mxu1 %v611_v1  ;;  %v614_v6 = vld [vmem:[%s721_s1 + $0x20] sm:$0xff]   ;;  %v620_v10 = vld [vmem:[%s722_s0 + $0x8] sm:$0xff]   ;;  %v622_v12 = vld [vmem:[%s722_s0 + $0x10] sm:$0xff]  }
   0x5   :  { %578 = vmatprep.mubr.bf16.mxu0 %v618_v4  ;;  %586 = vmatprep.mubr.bf16.mxu1 %v619_v5  ;;  %v621_v11 = vld [vmem:[%s722_s0 + $0x28] sm:$0xff]   ;;  %v623_v13 = vld [vmem:[%s722_s0 + $0x30] sm:$0xff]   ;;  %v624_v14 = vld [vmem:[%s722_s0 + $0x18] sm:$0xff]  }
   0x6   :  { %v625_v15 = vld [vmem:[%s722_s0 + $0x38] sm:$0xff]   ;;  %v466_v16 = vld [vmem:[%s723_s2] ss:$0 sm:$0xff] }
   0x7   :  { %565 = vmatpush3.bf16.msra.mxu0 %v611_v1  ;;  %603 = vmatpush3.bf16.msra.mxu1 %v611_v1 }
   0x8   :  { %566 = vmatprep.subr.bf16.mxu0 %v612_v2  ;;  %596 = vmatprep.subr.bf16.mxu1 %v612_v2 }
   0xb   :  { %567 = vmatpush3.bf16.msra.mxu0 %v612_v2  ;;  %604 = vmatpush3.bf16.msra.mxu1 %v612_v2 }
   0xc   :  { %568 = vmatprep.subr.bf16.mxu0 %v613_v3  ;;  %597 = vmatprep.subr.bf16.mxu1 %v613_v3 }
   0xf   :  { %569 = vmatpush3.bf16.msra.mxu0 %v613_v3  ;;  %605 = vmatpush3.bf16.msra.mxu1 %v613_v3 }
  0x10   :  { %570 = vmatprep.subr.bf16.mxu0 %v614_v6  ;;  %598 = vmatprep.subr.bf16.mxu1 %v614_v6 }
  0x13   :  { %571 = vmatpush3.bf16.msra.mxu0 %v614_v6  ;;  %606 = vmatpush3.bf16.msra.mxu1 %v614_v6 }
  0x14   :  { %572 = vmatprep.subr.bf16.mxu0 %v615_v7  ;;  %599 = vmatprep.subr.bf16.mxu1 %v615_v7 }
  0x17   :  { %573 = vmatpush3.bf16.msra.mxu0 %v615_v7  ;;  %607 = vmatpush3.bf16.msra.mxu1 %v615_v7 }
  0x18   :  { %574 = vmatprep.subr.bf16.mxu0 %v616_v8  ;;  %600 = vmatprep.subr.bf16.mxu1 %v616_v8 }
  0x1b   :  { %575 = vmatpush3.bf16.msra.mxu0 %v616_v8  ;;  %608 = vmatpush3.bf16.msra.mxu1 %v616_v8 }
  0x1c   :  { %576 = vmatprep.subr.bf16.mxu0 %v617_v9  ;;  %601 = vmatprep.subr.bf16.mxu1 %v617_v9 }
  0x1f   :  { %577 = vmatpush3.bf16.msra.mxu0 %v617_v9  ;;  %609 = vmatpush3.bf16.msra.mxu1 %v617_v9 }
  0x22   :  { %579 = vmatmul.mubr.bf16.vlgmr.msra.gmra.mrb[0].mxu0 %v620_v10  ;;  %587 = vmatmul.mubr.bf16.vlgmr.msra.gmra.mrb[0].mxu1 %v621_v11 }
  0x23   :  { %582 = vmatprep.mubr.bf16.mxu0 %v622_v12  ;;  %590 = vmatprep.mubr.bf16.mxu1 %v623_v13 }
  0x2a   :  { %583 = vmatmul.mubr.bf16.gmra.mrb[4].mxu0 %v624_v14  ;;  %591 = vmatmul.mubr.bf16.gmra.mrb[4].mxu1 %v625_v15 }
  0xf5   :  { %v580_v17 = vpop.f32.mrb[0].mxu0  ;;  %v588_v18 = vpop.f32.mrb[0].mxu1 }
  0xf6   :  { %v336_v19 = vadd.f32 %v580_v17, %v466_v16  ;;  %v344_v20 = vadd.f32 %v588_v18, %v466_v16  ;;  %v213_v21 = vpop.f32.mrb[1].mxu0  ;;  %v245_v22 = vpop.f32.mrb[1].mxu1 }
  0xf7   :  { %v334_v23 = vadd.f32 %v466_v16, %v213_v21  ;;  %v342_v24 = vadd.f32 %v466_v16, %v245_v22  ;;  %v581_v25 = vpop.f32.mrb[2].mxu0  ;;  %v589_v26 = vpop.f32.mrb[2].mxu1 }
  0xf8   :  { %v337_v27 = vadd.f32 %v581_v25, %v466_v16  ;;  %v345_v28 = vadd.f32 %v589_v26, %v466_v16  ;;  %v216_v29 = vpop.f32.mrb[3].mxu0  ;;  %v248_v30 = vpop.f32.mrb[3].mxu1  ;;  %v352_v33 = vmax.f32 %v336_v19, 0.0  ;;  %v360_v34 = vmax.f32 %v344_v20, 0.0 }
  0xf9   :  { %v335_v31 = vadd.f32 %v466_v16, %v216_v29  ;;  %v343_v32 = vadd.f32 %v466_v16, %v248_v30  ;;  %v350_v37 = vmax.f32 %v334_v23, 0.0  ;;  %v358_v38 = vmax.f32 %v342_v24, 0.0 }
  0xfa   :  { %v353_v35 = vmax.f32 %v337_v27, 0.0  ;;  %v361_v36 = vmax.f32 %v345_v28, 0.0 }
  0xfb   :  { %v351_v39 = vmax.f32 %v335_v31, 0.0  ;;  %v359_v40 = vmax.f32 %v343_v32, 0.0 }
  0xfc   :  { %v507_v41 = vpack.c.bf16 %v353_v35, %v352_v33  ;;  %v527_v42 = vpack.c.bf16 %v361_v36, %v360_v34 }
  0xfd   :  { %v502_v43 = vpack.c.bf16 %v351_v39, %v350_v37  ;;  %v522_v44 = vpack.c.bf16 %v359_v40, %v358_v38  ;;  %v584_v45 = vpop.f32.mrb[4].mxu0  ;;  %v592_v46 = vpop.f32.mrb[4].mxu1 }
  0xfe   :  { %539 = vst [vmem:[%s724_s3 + $0x8] sm:$0xff] %v507_v41   ;;  %543 = vst [vmem:[%s724_s3 + $0x28] sm:$0xff] %v527_v42   ;;  %v340_v47 = vadd.f32 %v584_v45, %v466_v16  ;;  %v348_v48 = vadd.f32 %v592_v46, %v466_v16  ;;  %v229_v49 = vpop.f32.mrb[5].mxu0  ;;  %v261_v50 = vpop.f32.mrb[5].mxu1 }
  0xff   :  { %503 = vst [vmem:[%s724_s3] sm:$0xff] %v502_v43   ;;  %542 = vst [vmem:[%s724_s3 + $0x20] sm:$0xff] %v522_v44   ;;  %v338_v51 = vadd.f32 %v466_v16, %v229_v49  ;;  %v346_v52 = vadd.f32 %v466_v16, %v261_v50  ;;  %v585_v53 = vpop.f32.mrb[6].mxu0  ;;  %v593_v54 = vpop.f32.mrb[6].mxu1 }
 0x100   :  { %v341_v55 = vadd.f32 %v585_v53, %v466_v16  ;;  %v349_v56 = vadd.f32 %v593_v54, %v466_v16  ;;  %v232_v57 = vpop.f32.mrb[7].mxu0  ;;  %v264_v58 = vpop.f32.mrb[7].mxu1  ;;  %v356_v61 = vmax.f32 %v340_v47, 0.0  ;;  %v364_v62 = vmax.f32 %v348_v48, 0.0 }
 0x101   :  { %v339_v59 = vadd.f32 %v466_v16, %v232_v57  ;;  %v347_v60 = vadd.f32 %v466_v16, %v264_v58  ;;  %v354_v1 = vmax.f32 %v338_v51, 0.0  ;;  %v362_v2 = vmax.f32 %v346_v52, 0.0 }
 0x102   :  { %v357_v63 = vmax.f32 %v341_v55, 0.0  ;;  %v365_v0 = vmax.f32 %v349_v56, 0.0 }
 0x103   :  { %v355_v3 = vmax.f32 %v339_v59, 0.0  ;;  %v363_v4 = vmax.f32 %v347_v60, 0.0 }
 0x104   :  { %v517_v5 = vpack.c.bf16 %v357_v63, %v356_v61  ;;  %v537_v6 = vpack.c.bf16 %v365_v0, %v364_v62 }
 0x105   :  { %v512_v7 = vpack.c.bf16 %v355_v3, %v354_v1  ;;  %v532_v8 = vpack.c.bf16 %v363_v4, %v362_v2 }
 0x106   :  { %541 = vst [vmem:[%s724_s3 + $0x18] sm:$0xff] %v517_v5   ;;  %545 = vst [vmem:[%s724_s3 + $0x38] sm:$0xff] %v537_v6  }
 0x107   :  { %540 = vst [vmem:[%s724_s3 + $0x10] sm:$0xff] %v512_v7   ;;  %544 = vst [vmem:[%s724_s3 + $0x30] sm:$0xff] %v532_v8  }

// kernel: _lambda_.12
= control target key start
LH: loop header
LB: loop body
LE: loop exit
PB: predicated region body
PF: predicated region fallthrough
CT: control target
= control target key end

     0   :  { %s638_s1 = inlined_call_operand.vmem [shape: f32[128,128], index: 1, kind: input, shape index: {}]   ;;  %s639_s0 = inlined_call_operand.vmem [shape: bf16[128,128], index: 0, kind: input, shape index: {}]   ;;  %s640_s2 = inlined_call_operand.vmem [shape: bf16[128,128], index: 2, kind: output, shape index: {}]  }
   0x1   :  { %v64_v0 = vld [vmem:[%s638_s1] sm:$0xff]  ;;  %v65_v1 = vld [vmem:[%s638_s1 + $0x8] sm:$0xff]  ;;  %v66_v2 = vld [vmem:[%s638_s1 + $0x10] sm:$0xff] }
   0x2   :  { %v80_v3 = vpack.c.bf16 %v65_v1, %v64_v0  ;;  %v67_v4 = vld [vmem:[%s638_s1 + $0x18] sm:$0xff]  ;;  %v68_v6 = vld [vmem:[%s638_s1 + $0x20] sm:$0xff]  ;;  %v69_v7 = vld [vmem:[%s638_s1 + $0x28] sm:$0xff] }
   0x3   :  { %v81_v5 = vpack.c.bf16 %v67_v4, %v66_v2  ;;  %v70_v8 = vld [vmem:[%s638_s1 + $0x30] sm:$0xff]  ;;  %v82_v9 = vpack.c.bf16 %v69_v7, %v68_v6  ;;  %v71_v10 = vld [vmem:[%s638_s1 + $0x38] sm:$0xff]  ;;  %v519_v11 = vld [vmem:[%s639_s0] sm:$0xff]  }
   0x4   :  { %471 = vmatprep.subr.bf16.mxu0 %v80_v3  ;;  %503 = vmatprep.subr.bf16.mxu1 %v80_v3  ;;  %v520_v12 = vld [vmem:[%s639_s0 + $0x20] sm:$0xff]   ;;  %v83_v13 = vpack.c.bf16 %v71_v10, %v70_v8  ;;  %v73_v15 = vld [vmem:[%s638_s1 + $0x48] sm:$0xff]  ;;  %v74_v17 = vld [vmem:[%s638_s1 + $0x50] sm:$0xff] }
   0x5   :  { %472 = vmatpush3.bf16.msra.mxu0 %v80_v3  ;;  %511 = vmatpush3.bf16.msra.mxu1 %v80_v3  ;;  %v72_v14 = vld [vmem:[%s638_s1 + $0x40] sm:$0xff]  ;;  %v75_v18 = vld [vmem:[%s638_s1 + $0x58] sm:$0xff]  ;;  %v77_v21 = vld [vmem:[%s638_s1 + $0x68] sm:$0xff] }
   0x6   :  { %473 = vmatprep.subr.bf16.mxu0 %v81_v5  ;;  %504 = vmatprep.subr.bf16.mxu1 %v81_v5  ;;  %v84_v16 = vpack.c.bf16 %v73_v15, %v72_v14  ;;  %v85_v19 = vpack.c.bf16 %v75_v18, %v74_v17  ;;  %v76_v20 = vld [vmem:[%s638_s1 + $0x60] sm:$0xff]  ;;  %v78_v23 = vld [vmem:[%s638_s1 + $0x70] sm:$0xff]  ;;  %v79_v24 = vld [vmem:[%s638_s1 + $0x78] sm:$0xff] }
   0x7   :  { %487 = vmatprep.mubr.bf16.mxu0 %v519_v11  ;;  %495 = vmatprep.mubr.bf16.mxu1 %v520_v12  ;;  %v86_v22 = vpack.c.bf16 %v77_v21, %v76_v20  ;;  %v87_v25 = vpack.c.bf16 %v79_v24, %v78_v23  ;;  %v521_v26 = vld [vmem:[%s639_s0 + $0x8] sm:$0xff]   ;;  %v523_v28 = vld [vmem:[%s639_s0 + $0x10] sm:$0xff]   ;;  %v525_v30 = vld [vmem:[%s639_s0 + $0x18] sm:$0xff]  }
   0x8   :  { %v522_v27 = vld [vmem:[%s639_s0 + $0x28] sm:$0xff]   ;;  %v524_v29 = vld [vmem:[%s639_s0 + $0x30] sm:$0xff]   ;;  %v526_v31 = vld [vmem:[%s639_s0 + $0x38] sm:$0xff]  }
   0x9   :  { %474 = vmatpush3.bf16.msra.mxu0 %v81_v5  ;;  %512 = vmatpush3.bf16.msra.mxu1 %v81_v5 }
   0xa   :  { %475 = vmatprep.subr.bf16.mxu0 %v82_v9  ;;  %505 = vmatprep.subr.bf16.mxu1 %v82_v9 }
   0xd   :  { %476 = vmatpush3.bf16.msra.mxu0 %v82_v9  ;;  %513 = vmatpush3.bf16.msra.mxu1 %v82_v9 }
   0xe   :  { %477 = vmatprep.subr.bf16.mxu0 %v83_v13  ;;  %506 = vmatprep.subr.bf16.mxu1 %v83_v13 }
  0x11   :  { %478 = vmatpush3.bf16.msra.mxu0 %v83_v13  ;;  %514 = vmatpush3.bf16.msra.mxu1 %v83_v13 }
  0x12   :  { %479 = vmatprep.subr.bf16.mxu0 %v84_v16  ;;  %507 = vmatprep.subr.bf16.mxu1 %v84_v16 }
  0x15   :  { %480 = vmatpush3.bf16.msra.mxu0 %v84_v16  ;;  %515 = vmatpush3.bf16.msra.mxu1 %v84_v16 }
  0x16   :  { %481 = vmatprep.subr.bf16.mxu0 %v85_v19  ;;  %508 = vmatprep.subr.bf16.mxu1 %v85_v19 }
  0x19   :  { %482 = vmatpush3.bf16.msra.mxu0 %v85_v19  ;;  %516 = vmatpush3.bf16.msra.mxu1 %v85_v19 }
  0x1a   :  { %483 = vmatprep.subr.bf16.mxu0 %v86_v22  ;;  %509 = vmatprep.subr.bf16.mxu1 %v86_v22 }
  0x1d   :  { %484 = vmatpush3.bf16.msra.mxu0 %v86_v22  ;;  %517 = vmatpush3.bf16.msra.mxu1 %v86_v22 }
  0x1e   :  { %485 = vmatprep.subr.bf16.mxu0 %v87_v25  ;;  %510 = vmatprep.subr.bf16.mxu1 %v87_v25 }
  0x21   :  { %486 = vmatpush3.bf16.msra.mxu0 %v87_v25  ;;  %518 = vmatpush3.bf16.msra.mxu1 %v87_v25 }
  0x24   :  { %488 = vmatmul.mubr.bf16.vlgmr.msra.gmra.mrb[0].mxu0 %v521_v26  ;;  %496 = vmatmul.mubr.bf16.vlgmr.msra.gmra.mrb[0].mxu1 %v522_v27 }
  0x25   :  { %491 = vmatprep.mubr.bf16.mxu0 %v523_v28  ;;  %499 = vmatprep.mubr.bf16.mxu1 %v524_v29 }
  0x2c   :  { %492 = vmatmul.mubr.bf16.gmra.mrb[4].mxu0 %v525_v30  ;;  %500 = vmatmul.mubr.bf16.gmra.mrb[4].mxu1 %v526_v31 }
  0xf7   :  { %v489_v32 = vpop.f32.mrb[0].mxu0  ;;  %v497_v33 = vpop.f32.mrb[0].mxu1 }
  0xf8   :  { %v170_v34 = vpop.f32.mrb[1].mxu0  ;;  %v202_v35 = vpop.f32.mrb[1].mxu1 }
  0xf9   :  { %v490_v36 = vpop.f32.mrb[2].mxu0  ;;  %v498_v37 = vpop.f32.mrb[2].mxu1 }
  0xfa   :  { %v416_v38 = vpack.c.bf16 %v490_v36, %v489_v32  ;;  %v436_v39 = vpack.c.bf16 %v498_v37, %v497_v33  ;;  %v173_v40 = vpop.f32.mrb[3].mxu0  ;;  %v205_v41 = vpop.f32.mrb[3].mxu1 }
  0xfb   :  { %v411_v42 = vpack.c.bf16 %v173_v40, %v170_v34  ;;  %v431_v43 = vpack.c.bf16 %v205_v41, %v202_v35 }
  0xfc   :  { %448 = vst [vmem:[%s640_s2 + $0x8] sm:$0xff] %v416_v38   ;;  %452 = vst [vmem:[%s640_s2 + $0x28] sm:$0xff] %v436_v39  }
  0xfd   :  { %412 = vst [vmem:[%s640_s2] sm:$0xff] %v411_v42   ;;  %451 = vst [vmem:[%s640_s2 + $0x20] sm:$0xff] %v431_v43  }
  0xff   :  { %v493_v44 = vpop.f32.mrb[4].mxu0  ;;  %v501_v45 = vpop.f32.mrb[4].mxu1 }
 0x100   :  { %v186_v46 = vpop.f32.mrb[5].mxu0  ;;  %v218_v47 = vpop.f32.mrb[5].mxu1 }
 0x101   :  { %v494_v48 = vpop.f32.mrb[6].mxu0  ;;  %v502_v49 = vpop.f32.mrb[6].mxu1 }
 0x102   :  { %v426_v50 = vpack.c.bf16 %v494_v48, %v493_v44  ;;  %v446_v51 = vpack.c.bf16 %v502_v49, %v501_v45  ;;  %v189_v52 = vpop.f32.mrb[7].mxu0  ;;  %v221_v53 = vpop.f32.mrb[7].mxu1 }
 0x103   :  { %v421_v54 = vpack.c.bf16 %v189_v52, %v186_v46  ;;  %v441_v55 = vpack.c.bf16 %v221_v53, %v218_v47 }
 0x104   :  { %450 = vst [vmem:[%s640_s2 + $0x18] sm:$0xff] %v426_v50   ;;  %454 = vst [vmem:[%s640_s2 + $0x38] sm:$0xff] %v446_v51  }
 0x105   :  { %449 = vst [vmem:[%s640_s2 + $0x10] sm:$0xff] %v421_v54   ;;  %453 = vst [vmem:[%s640_s2 + $0x30] sm:$0xff] %v441_v55  }

// kernel: _lambda_.15
= control target key start
LH: loop header
LB: loop body
LE: loop exit
PB: predicated region body
PF: predicated region fallthrough
CT: control target
= control target key end

     0   :  { %s586_s1 = inlined_call_operand.vmem [shape: bf16[128,128], index: 1, kind: input, shape index: {}]   ;;  %s587_s0 = inlined_call_operand.vmem [shape: bf16[128,128], index: 0, kind: input, shape index: {}]   ;;  %s588_s2 = inlined_call_operand.vmem [shape: f32[1,128], index: 2, kind: input, shape index: {}]   ;;  %s589_s3 = inlined_call_operand.vmem [shape: f32[128,128], index: 3, kind: output, shape index: {}]  }
   0x1   :  { %v451_v0 = vld [vmem:[%s586_s1] sm:$0xff]   ;;  %v452_v1 = vld [vmem:[%s586_s1 + $0x8] sm:$0xff]   ;;  %v453_v2 = vld [vmem:[%s586_s1 + $0x10] sm:$0xff]  }
   0x2   :  { %403 = vmatprep.subr.bf16.mxu0 %v451_v0  ;;  %435 = vmatprep.subr.bf16.mxu1 %v451_v0  ;;  %v454_v3 = vld [vmem:[%s586_s1 + $0x18] sm:$0xff]   ;;  %v459_v4 = vld [vmem:[%s587_s0] sm:$0xff]   ;;  %v456_v7 = vld [vmem:[%s586_s1 + $0x28] sm:$0xff]  }
   0x3   :  { %404 = vmatpush3.bf16.msra.mxu0 %v451_v0  ;;  %443 = vmatpush3.bf16.msra.mxu1 %v451_v0  ;;  %v460_v5 = vld [vmem:[%s587_s0 + $0x20] sm:$0xff]   ;;  %v457_v8 = vld [vmem:[%s586_s1 + $0x30] sm:$0xff]   ;;  %v458_v9 = vld [vmem:[%s586_s1 + $0x38] sm:$0xff]  }
   0x4   :  { %405 = vmatprep.subr.bf16.mxu0 %v452_v1  ;;  %436 = vmatprep.subr.bf16.mxu1 %v452_v1  ;;  %v455_v6 = vld [vmem:[%s586_s1 + $0x20] sm:$0xff]   ;;  %v461_v10 = vld [vmem:[%s587_s0 + $0x8] sm:$0xff]   ;;  %v463_v12 = vld [vmem:[%s587_s0 + $0x10] sm:$0xff]  }
   0x5   :  { %419 = vmatprep.mubr.bf16.mxu0 %v459_v4  ;;  %427 = vmatprep.mubr.bf16.mxu1 %v460_v5  ;;  %v462_v11 = vld [vmem:[%s587_s0 + $0x28] sm:$0xff]   ;;  %v464_v13 = vld [vmem:[%s587_s0 + $0x30] sm:$0xff]   ;;  %v465_v14 = vld [vmem:[%s587_s0 + $0x18] sm:$0xff]  }
   0x6   :  { %v466_v15 = vld [vmem:[%s587_s0 + $0x38] sm:$0xff]   ;;  %v386_v16 = vld [vmem:[%s588_s2] ss:$0 sm:$0xff] }
   0x7   :  { %406 = vmatpush3.bf16.msra.mxu0 %v452_v1  ;;  %444 = vmatpush3.bf16.msra.mxu1 %v452_v1 }
   0x8   :  { %407 = vmatprep.subr.bf16.mxu0 %v453_v2  ;;  %437 = vmatprep.subr.bf16.mxu1 %v453_v2 }
   0xb   :  { %408 = vmatpush3.bf16.msra.mxu0 %v453_v2  ;;  %445 = vmatpush3.bf16.msra.mxu1 %v453_v2 }
   0xc   :  { %409 = vmatprep.subr.bf16.mxu0 %v454_v3  ;;  %438 = vmatprep.subr.bf16.mxu1 %v454_v3 }
   0xf   :  { %410 = vmatpush3.bf16.msra.mxu0 %v454_v3  ;;  %446 = vmatpush3.bf16.msra.mxu1 %v454_v3 }
  0x10   :  { %411 = vmatprep.subr.bf16.mxu0 %v455_v6  ;;  %439 = vmatprep.subr.bf16.mxu1 %v455_v6 }
  0x13   :  { %412 = vmatpush3.bf16.msra.mxu0 %v455_v6  ;;  %447 = vmatpush3.bf16.msra.mxu1 %v455_v6 }
  0x14   :  { %413 = vmatprep.subr.bf16.mxu0 %v456_v7  ;;  %440 = vmatprep.subr.bf16.mxu1 %v456_v7 }
  0x17   :  { %414 = vmatpush3.bf16.msra.mxu0 %v456_v7  ;;  %448 = vmatpush3.bf16.msra.mxu1 %v456_v7 }
  0x18   :  { %415 = vmatprep.subr.bf16.mxu0 %v457_v8  ;;  %441 = vmatprep.subr.bf16.mxu1 %v457_v8 }
  0x1b   :  { %416 = vmatpush3.bf16.msra.mxu0 %v457_v8  ;;  %449 = vmatpush3.bf16.msra.mxu1 %v457_v8 }
  0x1c   :  { %417 = vmatprep.subr.bf16.mxu0 %v458_v9  ;;  %442 = vmatprep.subr.bf16.mxu1 %v458_v9 }
  0x1f   :  { %418 = vmatpush3.bf16.msra.mxu0 %v458_v9  ;;  %450 = vmatpush3.bf16.msra.mxu1 %v458_v9 }
  0x22   :  { %420 = vmatmul.mubr.bf16.vlgmr.msra.gmra.mrb[0].mxu0 %v461_v10  ;;  %428 = vmatmul.mubr.bf16.vlgmr.msra.gmra.mrb[0].mxu1 %v462_v11 }
  0x23   :  { %423 = vmatprep.mubr.bf16.mxu0 %v463_v12  ;;  %431 = vmatprep.mubr.bf16.mxu1 %v464_v13 }
  0x2a   :  { %424 = vmatmul.mubr.bf16.gmra.mrb[4].mxu0 %v465_v14  ;;  %432 = vmatmul.mubr.bf16.gmra.mrb[4].mxu1 %v466_v15 }
  0xf5   :  { %v421_v17 = vpop.f32.mrb[0].mxu0  ;;  %v429_v18 = vpop.f32.mrb[0].mxu1 }
  0xf6   :  { %v336_v19 = vadd.f32 %v421_v17, %v386_v16  ;;  %v344_v20 = vadd.f32 %v429_v18, %v386_v16  ;;  %v213_v21 = vpop.f32.mrb[1].mxu0  ;;  %v245_v22 = vpop.f32.mrb[1].mxu1 }
  0xf7   :  { %v334_v23 = vadd.f32 %v386_v16, %v213_v21  ;;  %v342_v24 = vadd.f32 %v386_v16, %v245_v22  ;;  %v422_v25 = vpop.f32.mrb[2].mxu0  ;;  %v430_v26 = vpop.f32.mrb[2].mxu1 }
  0xf8   :  { %352 = vst [vmem:[%s589_s3 + $0x10] sm:$0xff] %v336_v19  ;;  %360 = vst [vmem:[%s589_s3 + $0x50] sm:$0xff] %v344_v20  ;;  %v337_v27 = vadd.f32 %v422_v25, %v386_v16  ;;  %v345_v28 = vadd.f32 %v430_v26, %v386_v16  ;;  %v216_v29 = vpop.f32.mrb[3].mxu0  ;;  %v248_v30 = vpop.f32.mrb[3].mxu1 }
  0xf9   :  { %350 = vst [vmem:[%s589_s3] sm:$0xff] %v334_v23  ;;  %358 = vst [vmem:[%s589_s3 + $0x40] sm:$0xff] %v342_v24  ;;  %v335_v31 = vadd.f32 %v386_v16, %v216_v29  ;;  %v343_v32 = vadd.f32 %v386_v16, %v248_v30 }
  0xfa   :  { %353 = vst [vmem:[%s589_s3 + $0x18] sm:$0xff] %v337_v27  ;;  %361 = vst [vmem:[%s589_s3 + $0x58] sm:$0xff] %v345_v28 }
  0xfb   :  { %351 = vst [vmem:[%s589_s3 + $0x8] sm:$0xff] %v335_v31  ;;  %359 = vst [vmem:[%s589_s3 + $0x48] sm:$0xff] %v343_v32 }
  0xfd   :  { %v425_v33 = vpop.f32.mrb[4].mxu0  ;;  %v433_v34 = vpop.f32.mrb[4].mxu1 }
  0xfe   :  { %v340_v35 = vadd.f32 %v425_v33, %v386_v16  ;;  %v348_v36 = vadd.f32 %v433_v34, %v386_v16  ;;  %v229_v37 = vpop.f32.mrb[5].mxu0  ;;  %v261_v38 = vpop.f32.mrb[5].mxu1 }
  0xff   :  { %v338_v39 = vadd.f32 %v386_v16, %v229_v37  ;;  %v346_v40 = vadd.f32 %v386_v16, %v261_v38  ;;  %v426_v41 = vpop.f32.mrb[6].mxu0  ;;  %v434_v42 = vpop.f32.mrb[6].mxu1 }
 0x100   :  { %356 = vst [vmem:[%s589_s3 + $0x30] sm:$0xff] %v340_v35  ;;  %364 = vst [vmem:[%s589_s3 + $0x70] sm:$0xff] %v348_v36  ;;  %v341_v43 = vadd.f32 %v426_v41, %v386_v16  ;;  %v349_v44 = vadd.f32 %v434_v42, %v386_v16  ;;  %v232_v45 = vpop.f32.mrb[7].mxu0  ;;  %v264_v46 = vpop.f32.mrb[7].mxu1 }
 0x101   :  { %354 = vst [vmem:[%s589_s3 + $0x20] sm:$0xff] %v338_v39  ;;  %362 = vst [vmem:[%s589_s3 + $0x60] sm:$0xff] %v346_v40  ;;  %v339_v47 = vadd.f32 %v386_v16, %v232_v45  ;;  %v347_v48 = vadd.f32 %v386_v16, %v264_v46 }
 0x102   :  { %357 = vst [vmem:[%s589_s3 + $0x38] sm:$0xff] %v341_v43  ;;  %365 = vst [vmem:[%s589_s3 + $0x78] sm:$0xff] %v349_v44 }
 0x103   :  { %355 = vst [vmem:[%s589_s3 + $0x28] sm:$0xff] %v339_v47  ;;  %363 = vst [vmem:[%s589_s3 + $0x68] sm:$0xff] %v347_v48 }

</bundles_post_ra>
